<compile_context>
chip_gen: v6e
topology: v6e:2x2x1
jax: 0.10.0
libtpu: 0.0.40
codegen_flags: <defaults>
</compile_context>

<pallas_src>
import jax
import jax.numpy as jnp
from jax import lax
from jax.experimental import pallas as pl
from jax.experimental.pallas import tpu as pltpu

EPS = 1e-5
LANE = 128          # TPU lane width; channel / node dims are padded to this
MIB = 2 ** 20


def _round_up(x, m):
    return ((x + m - 1) // m) * m


def _pad_to(x, shape):
    return jnp.pad(x, [(0, t - s) for s, t in zip(x.shape, shape)])


def _vmem_capacity_bytes():
    """Generation-aware VMEM capacity (128 MiB v5e/v6e, 64 MiB per-TC v7x)."""
    try:
        info = pltpu.get_tpu_info()
        cap = getattr(info, "vmem_capacity_bytes", None)
        if cap:
            return int(cap)
    except Exception:
        pass
    return 64 * MIB      # conservative fallback (v7x-sized)


# ---------------------------------------------------------------------------
# Fused kernel factory
# ---------------------------------------------------------------------------
def _make_fused_kernel(*, n_true, n_pad, c_pad, num_layers, matmul_dtype,
                       stream_a, row_tile):
    """Fused forward: GNN.mlp + all GCNConvLayers in a single Pallas kernel."""

    inv_n = 1.0 / float(n_true)

    def bn_scale_shift(pre, gamma, beta, mask_row):
        # Training-mode BatchNorm1d statistics over VALID rows only, in ONE
        # pass: masked sums via skinny (1,N)@(N,C) MXU matmuls (keeps the
        # VALU/XLU slots free), then gamma * rsqrt(var+eps) folded into a
        # per-column scale/shift so normalize+affine+ReLU becomes a single
        # fused VPU pass:  h = max(pre*scale + shift, 0).
        s1 = jnp.dot(mask_row, pre, preferred_element_type=jnp.float32)
        s2 = jnp.dot(mask_row, pre * pre, preferred_element_type=jnp.float32)
        mean = s1 * inv_n
        var = s2 * inv_n - mean * mean                 # biased variance
        scale = gamma * lax.rsqrt(var + EPS)
        shift = beta - mean * scale
        return scale, shift

    if not stream_a:
        # ------ A_norm resident in VMEM for all layers (small graphs) ------
        def kernel(x_ref, a_ref, w0_ref, b0_ref, g0_ref, be0_ref,
                   wcat_ref, bsum_ref, gam_ref, bet_ref, mask_ref,
                   o_ref, h_scr):
            mask_row = mask_ref[...]                   # (1, n_pad)
            # GNN.mlp : ReLU(BN(x @ W0 + b0))
            pre = jnp.dot(x_ref[...], w0_ref[...],
                          preferred_element_type=jnp.float32) + b0_ref[...]
            scale, shift = bn_scale_shift(pre, g0_ref[...], be0_ref[...],
                                          mask_row)
            h_scr[...] = jnp.maximum(pre * scale + shift,
                                     0.0).astype(h_scr.dtype)
            for l in range(num_layers):      # static: num_layers is small
                # One fused (C, 2C) matmul: [h@Wlin | h@Wgcn]
                p = jnp.dot(h_scr[...], wcat_ref[l],
                            preferred_element_type=jnp.float32)
                xw = p[:, c_pad:].astype(matmul_dtype)          # h @ W_gcn
                agg = jnp.dot(a_ref[...], xw,
                              preferred_element_type=jnp.float32)
                pre = p[:, :c_pad] + bsum_ref[l] + agg
                scale, shift = bn_scale_shift(pre, gam_ref[l], bet_ref[l],
                                              mask_row)
                act = jnp.maximum(pre * scale + shift, 0.0)
                if l == num_layers - 1:
                    o_ref[...] = act          # final layer -> f32 output
                else:
                    h_scr[...] = act.astype(h_scr.dtype)

        return kernel

    # ------ A_norm streamed from HBM in (row_tile, n_pad) slabs with a ------
    # ------ manual, double-buffered DMA pipeline (large graphs).       ------
    n_slabs = n_pad // row_tile
    total_slabs = num_layers * n_slabs

    def kernel(x_ref, a_hbm, w0_ref, b0_ref, g0_ref, be0_ref,
               wcat_ref, bsum_ref, gam_ref, bet_ref, mask_ref,
               o_ref, h_scr, xw_scr, pre_scr, abuf, sem):
        mask_row = mask_ref[...]

        def fetch(slab, slot):
            pltpu.make_async_copy(a_hbm.at[slab], abuf.at[slot],
                                  sem.at[slot]).start()

        # A does not depend on h: start streaming the first slab immediately
        # so its DMA overlaps the MLP + first weight matmul.
        fetch(0, 0)

        pre = jnp.dot(x_ref[...], w0_ref[...],
                      preferred_element_type=jnp.float32) + b0_ref[...]
        scale, shift = bn_scale_shift(pre, g0_ref[...], be0_ref[...],
                                      mask_row)
        h_scr[...] = jnp.maximum(pre * scale + shift, 0.0).astype(h_scr.dtype)

        for l in range(num_layers):          # static: num_layers is small
            p = jnp.dot(h_scr[...], wcat_ref[l],
                        preferred_element_type=jnp.float32)
            xw_scr[...] = p[:, c_pad:].astype(matmul_dtype)     # h @ W_gcn
            pre_scr[...] = p[:, :c_pad] + bsum_ref[l]           # lin + biases

            base = l * n_slabs               # global slab counter -> parity

            if n_slabs <= 8:
                # Static unroll: smallest overhead, fully concrete DMA slots.
                for s in range(n_slabs):
                    g = base + s
                    slot = g % 2
                    # Prefetch next slab (possibly slab 0 of the NEXT layer)
                    # BEFORE waiting: the other buffer was consumed already.
                    if g + 1 < total_slabs:
                        fetch((s + 1) % n_slabs, 1 - slot)
                    pltpu.make_async_copy(a_hbm.at[s], abuf.at[slot],
                                          sem.at[slot]).wait()
                    agg = jnp.dot(abuf[slot], xw_scr[...],
                                  preferred_element_type=jnp.float32)
                    r0 = s * row_tile
                    pre_scr[pl.ds(r0, row_tile), :] = (
                        pre_scr[pl.ds(r0, row_tile), :] + agg)
            else:
                # Many slabs: lax.fori_loop bounds code size / compile time.
                # TODO(synk): K-tile each slab (DMA (row_tile, k_tile) blocks)
                # to bound A-slab scratch further for very large n_pad on v7x.
                def slab_body(s, carry):
                    g = base + s
                    slot = lax.rem(g, 2)

                    @pl.when(g + 1 < total_slabs)
                    def _():
                        fetch(lax.rem(s + 1, n_slabs), 1 - slot)

                    pltpu.make_async_copy(a_hbm.at[s], abuf.at[slot],
                                          sem.at[slot]).wait()
                    agg = jnp.dot(abuf[slot], xw_scr[...],
                                  preferred_element_type=jnp.float32)
                    r0 = pl.multiple_of(s * row_tile, row_tile)
                    pre_scr[pl.ds(r0, row_tile), :] = (
                        pre_scr[pl.ds(r0, row_tile), :] + agg)
                    return carry

                lax.fori_loop(0, n_slabs, slab_body, 0)

            pre_full = pre_scr[...]
            scale, shift = bn_scale_shift(pre_full, gam_ref[l], bet_ref[l],
                                          mask_row)
            act = jnp.maximum(pre_full * scale + shift, 0.0)
            if l == num_layers - 1:
                o_ref[...] = act
            else:
                h_scr[...] = act.astype(h_scr.dtype)

    return kernel


# ---------------------------------------------------------------------------
# Graph preprocessing / parameters
# ---------------------------------------------------------------------------
def build_norm_adj(edge_index, num_nodes, padded_num_nodes=None):
    """Dense D^-1/2 (A + I) D^-1/2; out[t, s] holds the norm of edge s -> t.

    Matches the spec's GCNConv.norm exactly: self loops appended with weight 1
    (assumes edge_index has no pre-existing self loops) and the degree is
    scatter-added over row = edge_index[0] (source), i.e.
    norm = deg_inv_sqrt[row] * w * deg_inv_sqrt[col]  (old-PyG convention).
    """
    if padded_num_nodes is None:
        padded_num_nodes = num_nodes
    loops = jnp.arange(num_nodes, dtype=edge_index.dtype)
    src = jnp.concatenate([edge_index[0], loops])
    dst = jnp.concatenate([edge_index[1], loops])
    w = jnp.ones(src.shape, dtype=jnp.float32)
    deg = jnp.zeros((padded_num_nodes,), jnp.float32).at[src].add(w)
    deg_inv_sqrt = jnp.where(deg > 0, 1.0 / jnp.sqrt(deg), 0.0)
    norm = deg_inv_sqrt[src] * w * deg_inv_sqrt[dst]
    a = jnp.zeros((padded_num_nodes, padded_num_nodes), jnp.float32)
    return a.at[dst, src].add(norm)


def _glorot(key, shape):
    limit = jnp.sqrt(6.0 / (shape[0] + shape[1]))
    return jax.random.uniform(key, shape, jnp.float32, -limit, limit)


def init_gnn_params(key, node_dim, embed_dim, num_layers):
    keys = jax.random.split(key, 2 + 2 * num_layers)
    params = {
        "mlp_w": _glorot(keys[0], (node_dim, embed_dim)),
        "mlp_b": jnp.zeros((1, embed_dim), jnp.float32),
        "mlp_gamma": jnp.ones((1, embed_dim), jnp.float32),
        "mlp_beta": jnp.zeros((1, embed_dim), jnp.float32),
        "layers": [],
    }
    for i in range(num_layers):
        params["layers"].append({
            "lin_w": _glorot(keys[2 + 2 * i], (embed_dim, embed_dim)),
            "lin_b": jnp.zeros((1, embed_dim), jnp.float32),
            "gcn_w": _glorot(keys[3 + 2 * i], (embed_dim, embed_dim)),
            "gcn_b": jnp.zeros((1, embed_dim), jnp.float32),
            "bn_gamma": jnp.ones((1, embed_dim), jnp.float32),
            "bn_beta": jnp.zeros((1, embed_dim), jnp.float32),
        })
    return params


# ---------------------------------------------------------------------------
# Wrapper: pack / pad params and run the single fused pallas_call
# ---------------------------------------------------------------------------
def gnn_forward(params, node_attr, edge_index, edge_attr, *,
                matmul_dtype=jnp.bfloat16, stream_a=None, row_tile=None,
                resident_a_budget_bytes=None):
    del edge_attr  # unused, exactly as in the PyTorch forward
    n, node_dim = node_attr.shape
    embed_dim = params["mlp_w"].shape[1]
    num_layers = len(params["layers"])
    assert num_layers >= 1

    n_pad = _round_up(n, LANE)          # nodes (also A_norm's lane axis)
    d_pad = _round_up(node_dim, LANE)
    c_pad = _round_up(embed_dim, LANE)  # channels: lane axis -> dense stores
    itemsize = jnp.dtype(matmul_dtype).itemsize
    vmem_cap = _vmem_capacity_bytes()

    # Dense normalized adjacency (padded rows / cols are exactly zero).
    # TODO(synk): fp8 A on v7x / int8+scale A on v5e-v6e would halve A bytes.
    a_norm = build_norm_adj(edge_index, n, n_pad).astype(matmul_dtype)

    # Pack / pad parameters.  Zero padding keeps padded channels exactly zero
    # through every layer; lin/gcn weights are fused into one (C, 2C) matmul
    # and their biases pre-summed.
    w0 = _pad_to(params["mlp_w"], (d_pad, c_pad)).astype(matmul_dtype)
    b0 = _pad_to(params["mlp_b"], (1, c_pad)).astype(jnp.float32)
    g0 = _pad_to(params["mlp_gamma"], (1, c_pad)).astype(jnp.float32)
    be0 = _pad_to(params["mlp_beta"], (1, c_pad)).astype(jnp.float32)
    wcat = jnp.stack([
        jnp.concatenate([_pad_to(lp["lin_w"], (c_pad, c_pad)),
                         _pad_to(lp["gcn_w"], (c_pad, c_pad))], axis=1)
        for lp in params["layers"]]).astype(matmul_dtype)          # (L, C, 2C)
    bsum = jnp.stack([_pad_to(lp["lin_b"] + lp["gcn_b"], (1, c_pad))
                      for lp in params["layers"]]).astype(jnp.float32)
    gam = jnp.stack([_pad_to(lp["bn_gamma"], (1, c_pad))
                     for lp in params["layers"]]).astype(jnp.float32)
    bet = jnp.stack([_pad_to(lp["bn_beta"], (1, c_pad))
                     for lp in params["layers"]]).astype(jnp.float32)
    x = _pad_to(node_attr, (n_pad, d_pad)).astype(matmul_dtype)
    # (1, Np) row mask: only BN statistics need masking (via skinny matmuls).
    row_mask = (jnp.arange(n_pad) < n).astype(jnp.float32)[None, :]

    param_bytes = (w0.nbytes + wcat.nbytes + b0.nbytes + g0.nbytes + be0.nbytes
                   + bsum.nbytes + gam.nbytes + bet.nbytes + row_mask.nbytes)
    h_bytes = n_pad * c_pad * itemsize          # h_scr now in matmul dtype
    out_bytes = n_pad * c_pad * 4
    a_bytes = n_pad * n_pad * itemsize
    base_bytes = param_bytes + x.nbytes + h_bytes + out_bytes

    # Generation-aware residency decision: keep A in VMEM iff everything fits
    # within a safe fraction of this chip's VMEM (avoids L full HBM passes of
    # A on 128 MiB chips and over-committing v7x's 64 MiB).
    if resident_a_budget_bytes is None:
        frac = 0.70 if vmem_cap >= 96 * MIB else 0.50
        resident_a_budget_bytes = max(int(frac * vmem_cap) - base_bytes, 0)
    if stream_a is None:
        stream_a = a_bytes > resident_a_budget_bytes

    # Row-slab tile for the streaming path (512 allowed on 128 MiB chips).
    if row_tile is None:
        max_tile = 512 if vmem_cap >= 96 * MIB else 256
    else:
        max_tile = max(int(row_tile), LANE)
    cands = [t for t in (512, 256, 128) if t <= max_tile and n_pad % t == 0]
    row_tile = cands[0] if cands else LANE
    while row_tile > LANE and 2 * row_tile * n_pad * itemsize > vmem_cap // 4:
        row_tile //= 2

    vmem = pltpu.MemorySpace.VMEM
    scratch = [pltpu.VMEM((n_pad, c_pad), matmul_dtype)]       # h (resident)
    if stream_a:
        a_in = a_norm.reshape(n_pad // row_tile, row_tile, n_pad)
        a_spec = pl.BlockSpec(memory_space=pl.ANY)             # stays in HBM
        scratch += [pltpu.VMEM((n_pad, c_pad), matmul_dtype),  # h @ W_gcn
                    pltpu.VMEM((n_pad, c_pad), jnp.float32),   # pre-activation
                    pltpu.VMEM((2, row_tile, n_pad), matmul_dtype),  # A slabs
                    pltpu.SemaphoreType.DMA((2,))]
    else:
        a_in = a_norm
        a_spec = pl.BlockSpec(memory_space=vmem)

    kernel = _make_fused_kernel(
        n_true=n, n_pad=n_pad, c_pad=c_pad, num_layers=num_layers,
        matmul_dtype=matmul_dtype, stream_a=stream_a, row_tile=row_tile)

    # Advisory cost estimate so XLA can schedule around this call.
    flops = (2 * n_pad * d_pad * c_pad
             + num_layers * (2 * n_pad * c_pad * 2 * c_pad
                             + 2 * n_pad * n_pad * c_pad)
             + (num_layers + 1) * 4 * n_pad * c_pad)           # BN stat dots
    a_passes = num_layers if stream_a else 1
    bytes_accessed = (x.nbytes + a_passes * a_norm.nbytes + param_bytes
                      + out_bytes)
    cost = pl.CostEstimate(flops=int(flops),
                           transcendentals=int((num_layers + 1) * c_pad),
                           bytes_accessed=int(bytes_accessed))

    # Generation-aware VMEM budget: never request the full physical VMEM
    # (~85% cap leaves headroom for compiler-internal scratch on v7x).
    if stream_a:
        need = base_bytes + (n_pad * c_pad * (itemsize + 4)
                             + 2 * row_tile * n_pad * itemsize)
    else:
        need = base_bytes + a_bytes
    limit_cap = int(0.85 * vmem_cap)
    vmem_limit = int(min(limit_cap, max(24 * MIB, int(1.5 * need) + 2 * MIB)))

    out = pl.pallas_call(
        kernel,
        out_shape=jax.ShapeDtypeStruct((n_pad, c_pad), jnp.float32),
        in_specs=([pl.BlockSpec(memory_space=vmem), a_spec]
                  + [pl.BlockSpec(memory_space=vmem)] * 9),
        out_specs=pl.BlockSpec(memory_space=vmem),
        scratch_shapes=scratch,
        compiler_params=pltpu.CompilerParams(vmem_limit_bytes=vmem_limit),
        cost_estimate=cost,
    )(x, a_in, w0, b0, g0, be0, wcat, bsum, gam, bet, row_mask)
    # TODO(synk): shard node rows / A slabs across the two v7x TensorCores
    # (pl.core_map + CMEM partial-sum exchange); this grid-less call uses one TC.
    return out[:n, :embed_dim]


# ---------------------------------------------------------------------------
# Pure-JAX reference (same math; optionally the same low-precision inputs)
# ---------------------------------------------------------------------------
def gnn_reference(params, node_attr, edge_index, edge_attr, *,
                  matmul_dtype=jnp.float32):
    del edge_attr
    a = build_norm_adj(edge_index, node_attr.shape[0]).astype(matmul_dtype)

    def mm(x, w):
        return jnp.dot(x.astype(matmul_dtype), w.astype(matmul_dtype),
                       preferred_element_type=jnp.float32)

    def bn_relu(h, gamma, beta):
        mean = jnp.mean(h, axis=0, keepdims=True)
        var = jnp.mean((h - mean) ** 2, axis=0, keepdims=True)
        return jnp.maximum(
            gamma * (h - mean) * jax.lax.rsqrt(var + EPS) + beta, 0.0)

    h = bn_relu(mm(node_attr, params["mlp_w"]) + params["mlp_b"],
                params["mlp_gamma"], params["mlp_beta"])
    for lp in params["layers"]:
        xw = mm(h, lp["gcn_w"]).astype(matmul_dtype)
        pre = (mm(h, lp["lin_w"]) + lp["lin_b"]
               + jnp.dot(a, xw, preferred_element_type=jnp.float32)
               + lp["gcn_b"])
        h = bn_relu(pre, lp["bn_gamma"], lp["bn_beta"])
    return h


# ---------------------------------------------------------------------------
if __name__ == "__main__":
    N_NODES, NODE_DIM, EDGE_DIM, EMBED_DIM, N_LAYERS = 8, 16, 8, 32, 2

    key = jax.random.PRNGKey(0)
    k_param, k_x, k_e = jax.random.split(key, 3)
    params = init_gnn_params(k_param, NODE_DIM, EMBED_DIM, N_LAYERS)

    node_attr = jax.random.normal(k_x, (N_NODES, NODE_DIM), jnp.float32)
    # small directed ring + a couple of extra edges, no self loops
    edge_index = jnp.array(
        [[0, 1, 2, 3, 4, 5, 6, 7, 0, 2],
         [1, 2, 3, 4, 5, 6, 7, 0, 3, 5]], dtype=jnp.int32)
    edge_attr = jax.random.normal(k_e, (edge_index.shape[1], EDGE_DIM),
                                  jnp.float32)  # accepted but unused

    # 1) default config: bf16 MXU inputs, A_norm resident in VMEM
    out_bf16 = jax.block_until_ready(
        gnn_forward(params, node_attr, edge_index, edge_attr,
                    matmul_dtype=jnp.bfloat16, stream_a=False))
    # 2) same numerics but exercising the HBM-streaming / double-buffer path
    out_stream = jax.block_until_ready(
        gnn_forward(params, node_attr, edge_index, edge_attr,
                    matmul_dtype=jnp.bfloat16, stream_a=True, row_tile=128))
    # 3) full-f32 matmuls for a tight check against the module's exact math
    out_f32 = jax.block_until_ready(
        gnn_forward(params, node_attr, edge_index, edge_attr,
                    matmul_dtype=jnp.float32, stream_a=False))

    ref_bf16 = gnn_reference(params, node_attr, edge_index, edge_attr,
                             matmul_dtype=jnp.bfloat16)
    ref_f32 = gnn_reference(params, node_attr, edge_index, edge_attr,
                            matmul_dtype=jnp.float32)

    assert out_bf16.shape == (N_NODES, EMBED_DIM)
    assert jnp.allclose(out_f32, ref_f32, rtol=1e-3, atol=1e-3), \
        "f32 Pallas output mismatch"
    assert jnp.allclose(out_bf16, ref_bf16, rtol=3e-3, atol=3e-3), \
        "bf16 Pallas output mismatch"
    assert jnp.allclose(out_stream, ref_bf16, rtol=3e-3, atol=3e-3), \
        "streamed-A Pallas output mismatch"

    print("KERNEL_OK")
</pallas_src>

<mosaic_0001>
module attributes {stable_mosaic.version = 11 : i64} {
  func.func @kernel(%arg0: memref<128x128xbf16, #tpu.memory_space<vmem>>, %arg1: memref<128x128xbf16, #tpu.memory_space<vmem>>, %arg2: memref<128x128xbf16, #tpu.memory_space<vmem>>, %arg3: memref<1x128xf32, #tpu.memory_space<vmem>>, %arg4: memref<1x128xf32, #tpu.memory_space<vmem>>, %arg5: memref<1x128xf32, #tpu.memory_space<vmem>>, %arg6: memref<2x128x256xbf16, #tpu.memory_space<vmem>>, %arg7: memref<2x1x128xf32, #tpu.memory_space<vmem>>, %arg8: memref<2x1x128xf32, #tpu.memory_space<vmem>>, %arg9: memref<2x1x128xf32, #tpu.memory_space<vmem>>, %arg10: memref<1x128xf32, #tpu.memory_space<vmem>>, %arg11: memref<128x128xf32, #tpu.memory_space<vmem>>, %arg12: memref<128x128xbf16, #tpu.memory_space<vmem>>) attributes {dimension_semantics = [], scalar_prefetch = 0 : i64, scratch_operands = 1 : i64, tpu.core_type = #tpu.core_type<tc>} {
    %c0 = arith.constant 0 : index
    %c0_0 = arith.constant 0 : index
    %0 = vector.load %arg10[%c0, %c0_0] : memref<1x128xf32, #tpu.memory_space<vmem>>, vector<1x128xf32>
    %c0_1 = arith.constant 0 : index
    %c0_2 = arith.constant 0 : index
    %1 = vector.load %arg0[%c0_1, %c0_2] : memref<128x128xbf16, #tpu.memory_space<vmem>>, vector<128x128xbf16>
    %c0_3 = arith.constant 0 : index
    %c0_4 = arith.constant 0 : index
    %2 = vector.load %arg2[%c0_3, %c0_4] : memref<128x128xbf16, #tpu.memory_space<vmem>>, vector<128x128xbf16>
    %cst = arith.constant dense<0.000000e+00> : vector<128x128xf32>
    %3 = tpu.matmul %1, %2, %cst {dimension_numbers = #tpu.dot_dimension_numbers<[1], [0], [0], [1], [0, 0, 1, 1], [], []>} : vector<128x128xbf16>, vector<128x128xbf16>, vector<128x128xf32> -> vector<128x128xf32>
    %c0_5 = arith.constant 0 : index
    %c0_6 = arith.constant 0 : index
    %4 = vector.load %arg3[%c0_5, %c0_6] : memref<1x128xf32, #tpu.memory_space<vmem>>, vector<1x128xf32>
    %5 = vector.broadcast %4 : vector<1x128xf32> to vector<128x128xf32>
    %6 = arith.addf %3, %5 : vector<128x128xf32>
    %c0_7 = arith.constant 0 : index
    %c0_8 = arith.constant 0 : index
    %7 = vector.load %arg4[%c0_7, %c0_8] : memref<1x128xf32, #tpu.memory_space<vmem>>, vector<1x128xf32>
    %c0_9 = arith.constant 0 : index
    %c0_10 = arith.constant 0 : index
    %8 = vector.load %arg5[%c0_9, %c0_10] : memref<1x128xf32, #tpu.memory_space<vmem>>, vector<1x128xf32>
    %cst_11 = arith.constant dense<0.000000e+00> : vector<1x128xf32>
    %9 = tpu.matmul %0, %6, %cst_11 {dimension_numbers = #tpu.dot_dimension_numbers<[1], [0], [0], [1], [0, 0, 1, 1], [], []>} : vector<1x128xf32>, vector<128x128xf32>, vector<1x128xf32> -> vector<1x128xf32>
    %10 = arith.mulf %6, %6 : vector<128x128xf32>
    %cst_12 = arith.constant dense<0.000000e+00> : vector<1x128xf32>
    %11 = tpu.matmul %0, %10, %cst_12 {dimension_numbers = #tpu.dot_dimension_numbers<[1], [0], [0], [1], [0, 0, 1, 1], [], []>} : vector<1x128xf32>, vector<128x128xf32>, vector<1x128xf32> -> vector<1x128xf32>
    %cst_13 = arith.constant 1.250000e-01 : f32
    %12 = vector.broadcast %cst_13 : f32 to vector<1x128xf32>
    %13 = arith.mulf %9, %12 : vector<1x128xf32>
    %cst_14 = arith.constant 1.250000e-01 : f32
    %14 = vector.broadcast %cst_14 : f32 to vector<1x128xf32>
    %15 = arith.mulf %11, %14 : vector<1x128xf32>
    %16 = arith.mulf %13, %13 : vector<1x128xf32>
    %17 = arith.subf %15, %16 : vector<1x128xf32>
    %cst_15 = arith.constant 9.99999974E-6 : f32
    %18 = vector.broadcast %cst_15 : f32 to vector<1x128xf32>
    %19 = arith.addf %17, %18 : vector<1x128xf32>
    %20 = math.rsqrt %19 : vector<1x128xf32>
    %21 = arith.mulf %7, %20 : vector<1x128xf32>
    %22 = arith.mulf %13, %21 : vector<1x128xf32>
    %23 = arith.subf %8, %22 : vector<1x128xf32>
    %24 = vector.broadcast %21 : vector<1x128xf32> to vector<128x128xf32>
    %25 = arith.mulf %6, %24 : vector<128x128xf32>
    %26 = vector.broadcast %23 : vector<1x128xf32> to vector<128x128xf32>
    %27 = arith.addf %25, %26 : vector<128x128xf32>
    %cst_16 = arith.constant 0.000000e+00 : f32
    %28 = vector.broadcast %cst_16 : f32 to vector<128x128xf32>
    %29 = arith.maximumf %27, %28 : vector<128x128xf32>
    %30 = arith.truncf %29 : vector<128x128xf32> to vector<128x128xbf16>
    %c0_17 = arith.constant 0 : index
    %c0_18 = arith.constant 0 : index
    %31 = vector.load %arg12[%c0_17, %c0_18] : memref<128x128xbf16, #tpu.memory_space<vmem>>, vector<128x128xbf16>
    tpu.vector_store %arg12[%c0_17, %c0_18], %30 {strides = array<i32>} : memref<128x128xbf16, #tpu.memory_space<vmem>>, vector<128x128xbf16>,
    %c0_19 = arith.constant 0 : index
    %c0_20 = arith.constant 0 : index
    %32 = vector.load %arg12[%c0_19, %c0_20] : memref<128x128xbf16, #tpu.memory_space<vmem>>, vector<128x128xbf16>
    %c0_21 = arith.constant 0 : index
    %c0_22 = arith.constant 0 : index
    %c0_23 = arith.constant 0 : index
    %33 = vector.load %arg6[%c0_21, %c0_22, %c0_23] : memref<2x128x256xbf16, #tpu.memory_space<vmem>>, vector<1x128x256xbf16>
    %34 = vector.shape_cast %33 : vector<1x128x256xbf16> to vector<128x256xbf16>
    %cst_24 = arith.constant dense<0.000000e+00> : vector<128x256xf32>
    %35 = tpu.matmul %32, %34, %cst_24 {dimension_numbers = #tpu.dot_dimension_numbers<[1], [0], [0], [1], [0, 0, 1, 1], [], []>} : vector<128x128xbf16>, vector<128x256xbf16>, vector<128x256xf32> -> vector<128x256xf32>
    %36 = vector.extract_strided_slice %35 {offsets = [0, 128], sizes = [128, 128], strides = [1, 1]} : vector<128x256xf32> to vector<128x128xf32>
    %37 = arith.truncf %36 : vector<128x128xf32> to vector<128x128xbf16>
    %c0_25 = arith.constant 0 : index
    %c0_26 = arith.constant 0 : index
    %38 = vector.load %arg1[%c0_25, %c0_26] : memref<128x128xbf16, #tpu.memory_space<vmem>>, vector<128x128xbf16>
    %cst_27 = arith.constant dense<0.000000e+00> : vector<128x128xf32>
    %39 = tpu.matmul %38, %37, %cst_27 {dimension_numbers = #tpu.dot_dimension_numbers<[1], [0], [0], [1], [0, 0, 1, 1], [], []>} : vector<128x128xbf16>, vector<128x128xbf16>, vector<128x128xf32> -> vector<128x128xf32>
    %40 = vector.extract_strided_slice %35 {offsets = [0, 0], sizes = [128, 128], strides = [1, 1]} : vector<128x256xf32> to vector<128x128xf32>
    %c0_28 = arith.constant 0 : index
    %c0_29 = arith.constant 0 : index
    %c0_30 = arith.constant 0 : index
    %41 = vector.load %arg7[%c0_28, %c0_29, %c0_30] : memref<2x1x128xf32, #tpu.memory_space<vmem>>, vector<1x1x128xf32>
    %42 = vector.shape_cast %41 : vector<1x1x128xf32> to vector<1x128xf32>
    %43 = vector.broadcast %42 : vector<1x128xf32> to vector<128x128xf32>
    %44 = arith.addf %40, %43 : vector<128x128xf32>
    %45 = arith.addf %44, %39 : vector<128x128xf32>
    %c0_31 = arith.constant 0 : index
    %c0_32 = arith.constant 0 : index
    %c0_33 = arith.constant 0 : index
    %46 = vector.load %arg8[%c0_31, %c0_32, %c0_33] : memref<2x1x128xf32, #tpu.memory_space<vmem>>, vector<1x1x128xf32>
    %47 = vector.shape_cast %46 : vector<1x1x128xf32> to vector<1x128xf32>
    %c0_34 = arith.constant 0 : index
    %c0_35 = arith.constant 0 : index
    %c0_36 = arith.constant 0 : index
    %48 = vector.load %arg9[%c0_34, %c0_35, %c0_36] : memref<2x1x128xf32, #tpu.memory_space<vmem>>, vector<1x1x128xf32>
    %49 = vector.shape_cast %48 : vector<1x1x128xf32> to vector<1x128xf32>
    %cst_37 = arith.constant dense<0.000000e+00> : vector<1x128xf32>
    %50 = tpu.matmul %0, %45, %cst_37 {dimension_numbers = #tpu.dot_dimension_numbers<[1], [0], [0], [1], [0, 0, 1, 1], [], []>} : vector<1x128xf32>, vector<128x128xf32>, vector<1x128xf32> -> vector<1x128xf32>
    %51 = arith.mulf %45, %45 : vector<128x128xf32>
    %cst_38 = arith.constant dense<0.000000e+00> : vector<1x128xf32>
    %52 = tpu.matmul %0, %51, %cst_38 {dimension_numbers = #tpu.dot_dimension_numbers<[1], [0], [0], [1], [0, 0, 1, 1], [], []>} : vector<1x128xf32>, vector<128x128xf32>, vector<1x128xf32> -> vector<1x128xf32>
    %cst_39 = arith.constant 1.250000e-01 : f32
    %53 = vector.broadcast %cst_39 : f32 to vector<1x128xf32>
    %54 = arith.mulf %50, %53 : vector<1x128xf32>
    %cst_40 = arith.constant 1.250000e-01 : f32
    %55 = vector.broadcast %cst_40 : f32 to vector<1x128xf32>
    %56 = arith.mulf %52, %55 : vector<1x128xf32>
    %57 = arith.mulf %54, %54 : vector<1x128xf32>
    %58 = arith.subf %56, %57 : vector<1x128xf32>
    %cst_41 = arith.constant 9.99999974E-6 : f32
    %59 = vector.broadcast %cst_41 : f32 to vector<1x128xf32>
    %60 = arith.addf %58, %59 : vector<1x128xf32>
    %61 = math.rsqrt %60 : vector<1x128xf32>
    %62 = arith.mulf %47, %61 : vector<1x128xf32>
    %63 = arith.mulf %54, %62 : vector<1x128xf32>
    %64 = arith.subf %49, %63 : vector<1x128xf32>
    %65 = vector.broadcast %62 : vector<1x128xf32> to vector<128x128xf32>
    %66 = arith.mulf %45, %65 : vector<128x128xf32>
    %67 = vector.broadcast %64 : vector<1x128xf32> to vector<128x128xf32>
    %68 = arith.addf %66, %67 : vector<128x128xf32>
    %cst_42 = arith.constant 0.000000e+00 : f32
    %69 = vector.broadcast %cst_42 : f32 to vector<128x128xf32>
    %70 = arith.maximumf %68, %69 : vector<128x128xf32>
    %71 = arith.truncf %70 : vector<128x128xf32> to vector<128x128xbf16>
    %c0_43 = arith.constant 0 : index
    %c0_44 = arith.constant 0 : index
    %72 = vector.load %arg12[%c0_43, %c0_44] : memref<128x128xbf16, #tpu.memory_space<vmem>>, vector<128x128xbf16>
    tpu.vector_store %arg12[%c0_43, %c0_44], %71 {strides = array<i32>} : memref<128x128xbf16, #tpu.memory_space<vmem>>, vector<128x128xbf16>,
    %c0_45 = arith.constant 0 : index
    %c0_46 = arith.constant 0 : index
    %73 = vector.load %arg12[%c0_45, %c0_46] : memref<128x128xbf16, #tpu.memory_space<vmem>>, vector<128x128xbf16>
    %c1 = arith.constant 1 : index
    %c0_47 = arith.constant 0 : index
    %c0_48 = arith.constant 0 : index
    %74 = vector.load %arg6[%c1, %c0_47, %c0_48] : memref<2x128x256xbf16, #tpu.memory_space<vmem>>, vector<1x128x256xbf16>
    %75 = vector.shape_cast %74 : vector<1x128x256xbf16> to vector<128x256xbf16>
    %cst_49 = arith.constant dense<0.000000e+00> : vector<128x256xf32>
    %76 = tpu.matmul %73, %75, %cst_49 {dimension_numbers = #tpu.dot_dimension_numbers<[1], [0], [0], [1], [0, 0, 1, 1], [], []>} : vector<128x128xbf16>, vector<128x256xbf16>, vector<128x256xf32> -> vector<128x256xf32>
    %77 = vector.extract_strided_slice %76 {offsets = [0, 128], sizes = [128, 128], strides = [1, 1]} : vector<128x256xf32> to vector<128x128xf32>
    %78 = arith.truncf %77 : vector<128x128xf32> to vector<128x128xbf16>
    %c0_50 = arith.constant 0 : index
    %c0_51 = arith.constant 0 : index
    %79 = vector.load %arg1[%c0_50, %c0_51] : memref<128x128xbf16, #tpu.memory_space<vmem>>, vector<128x128xbf16>
    %cst_52 = arith.constant dense<0.000000e+00> : vector<128x128xf32>
    %80 = tpu.matmul %79, %78, %cst_52 {dimension_numbers = #tpu.dot_dimension_numbers<[1], [0], [0], [1], [0, 0, 1, 1], [], []>} : vector<128x128xbf16>, vector<128x128xbf16>, vector<128x128xf32> -> vector<128x128xf32>
    %81 = vector.extract_strided_slice %76 {offsets = [0, 0], sizes = [128, 128], strides = [1, 1]} : vector<128x256xf32> to vector<128x128xf32>
    %c1_53 = arith.constant 1 : index
    %c0_54 = arith.constant 0 : index
    %c0_55 = arith.constant 0 : index
    %82 = vector.load %arg7[%c1_53, %c0_54, %c0_55] : memref<2x1x128xf32, #tpu.memory_space<vmem>>, vector<1x1x128xf32>
    %83 = vector.shape_cast %82 : vector<1x1x128xf32> to vector<1x128xf32>
    %84 = vector.broadcast %83 : vector<1x128xf32> to vector<128x128xf32>
    %85 = arith.addf %81, %84 : vector<128x128xf32>
    %86 = arith.addf %85, %80 : vector<128x128xf32>
    %c1_56 = arith.constant 1 : index
    %c0_57 = arith.constant 0 : index
    %c0_58 = arith.constant 0 : index
    %87 = vector.load %arg8[%c1_56, %c0_57, %c0_58] : memref<2x1x128xf32, #tpu.memory_space<vmem>>, vector<1x1x128xf32>
    %88 = vector.shape_cast %87 : vector<1x1x128xf32> to vector<1x128xf32>
    %c1_59 = arith.constant 1 : index
    %c0_60 = arith.constant 0 : index
    %c0_61 = arith.constant 0 : index
    %89 = vector.load %arg9[%c1_59, %c0_60, %c0_61] : memref<2x1x128xf32, #tpu.memory_space<vmem>>, vector<1x1x128xf32>
    %90 = vector.shape_cast %89 : vector<1x1x128xf32> to vector<1x128xf32>
    %cst_62 = arith.constant dense<0.000000e+00> : vector<1x128xf32>
    %91 = tpu.matmul %0, %86, %cst_62 {dimension_numbers = #tpu.dot_dimension_numbers<[1], [0], [0], [1], [0, 0, 1, 1], [], []>} : vector<1x128xf32>, vector<128x128xf32>, vector<1x128xf32> -> vector<1x128xf32>
    %92 = arith.mulf %86, %86 : vector<128x128xf32>
    %cst_63 = arith.constant dense<0.000000e+00> : vector<1x128xf32>
    %93 = tpu.matmul %0, %92, %cst_63 {dimension_numbers = #tpu.dot_dimension_numbers<[1], [0], [0], [1], [0, 0, 1, 1], [], []>} : vector<1x128xf32>, vector<128x128xf32>, vector<1x128xf32> -> vector<1x128xf32>
    %cst_64 = arith.constant 1.250000e-01 : f32
    %94 = vector.broadcast %cst_64 : f32 to vector<1x128xf32>
    %95 = arith.mulf %91, %94 : vector<1x128xf32>
    %cst_65 = arith.constant 1.250000e-01 : f32
    %96 = vector.broadcast %cst_65 : f32 to vector<1x128xf32>
    %97 = arith.mulf %93, %96 : vector<1x128xf32>
    %98 = arith.mulf %95, %95 : vector<1x128xf32>
    %99 = arith.subf %97, %98 : vector<1x128xf32>
    %cst_66 = arith.constant 9.99999974E-6 : f32
    %100 = vector.broadcast %cst_66 : f32 to vector<1x128xf32>
    %101 = arith.addf %99, %100 : vector<1x128xf32>
    %102 = math.rsqrt %101 : vector<1x128xf32>
    %103 = arith.mulf %88, %102 : vector<1x128xf32>
    %104 = arith.mulf %95, %103 : vector<1x128xf32>
    %105 = arith.subf %90, %104 : vector<1x128xf32>
    %106 = vector.broadcast %103 : vector<1x128xf32> to vector<128x128xf32>
    %107 = arith.mulf %86, %106 : vector<128x128xf32>
    %108 = vector.broadcast %105 : vector<1x128xf32> to vector<128x128xf32>
    %109 = arith.addf %107, %108 : vector<128x128xf32>
    %cst_67 = arith.constant 0.000000e+00 : f32
    %110 = vector.broadcast %cst_67 : f32 to vector<128x128xf32>
    %111 = arith.maximumf %109, %110 : vector<128x128xf32>
    %c0_68 = arith.constant 0 : index
    %c0_69 = arith.constant 0 : index
    %112 = vector.load %arg11[%c0_68, %c0_69] : memref<128x128xf32, #tpu.memory_space<vmem>>, vector<128x128xf32>
    tpu.vector_store %arg11[%c0_68, %c0_69], %111 {strides = array<i32>} : memref<128x128xf32, #tpu.memory_space<vmem>>, vector<128x128xf32>,
    return
  }
}

</mosaic_0001>

<bundles_post_ra>
// kernel: tpu_custom_call.1
= control target key start
LH: loop header
LB: loop body
LE: loop exit
PB: predicated region body
PF: predicated region fallthrough
CT: control target
= control target key end

     0   :  { %16 = vsyncpa [#allocation4], 0  ;;  %s3852_s0 = inlined_call_operand.hbm [shape: bf16[128,128], index: 0, kind: input, shape index: {}]   ;;  %s3853_s1 = inlined_call_operand.hbm [shape: bf16[128,128], index: 1, kind: input, shape index: {}]   ;;  %s3854_s2 = inlined_call_operand.hbm [shape: bf16[128,128], index: 2, kind: input, shape index: {}]   ;;  %s3855_s3 = inlined_call_operand.vmem [shape: f32[1,128], index: 3, kind: input, shape index: {}]   ;;  %s3856_s4 = inlined_call_operand.hbm [shape: f32[1,128], index: 4, kind: input, shape index: {}]   ;;  %s3857_s5 = inlined_call_operand.vmem [shape: f32[1,128], index: 5, kind: input, shape index: {}]   ;;  %s3858_s6 = inlined_call_operand.hbm [shape: bf16[2,128,256], index: 6, kind: input, shape index: {}]   ;;  %s3859_s7 = inlined_call_operand.vmem [shape: f32[2,1,128], index: 7, kind: input, shape index: {}]   ;;  %s3860_s8 = inlined_call_operand.vmem [shape: f32[2,1,128], index: 8, kind: input, shape index: {}]   ;;  %s3861_s9 = inlined_call_operand.vmem [shape: f32[2,1,128], index: 9, kind: input, shape index: {}]   ;;  %s3862_s10 = inlined_call_operand.vmem [shape: f32[1,128], index: 10, kind: input, shape index: {}]   ;;  %s3863_s11 = inlined_call_operand.hbm [shape: f32[128,128], index: 11, kind: output, shape index: {}]  }
   0x1   :  { %17 = vsyncpa [#allocation7], 0 }
   0x2   :  { %18 = vsyncpa [#allocation10], 0 }
   0x3   :  { %19 = vsyncpa [#allocation5], 0  ;;  %s3125_s17 = smov [#allocation6]   ;;  %s3126_s19 = smov [#allocation9]  }
   0x4   :  { %s37_s18 = sshll.u32 %s3125_s17, 4  ;;  %s64_s20 = sshll.u32 %s3126_s19, 4  ;;  %s38_s18 = int_to_ptr.vmem [resolvable:$true] %s37_s18  ;;  %s65_s20 = int_to_ptr.vmem [resolvable:$true] %s64_s20 }
   0x5   :  { %s3005_s21 = scalar_lea.vmem %s38_s18, 1024  ;;  %p3010_p1 = scmp.lt.s32.totalorder %s38_s18, %s38_s18 }
   0x6   :  { %p3006_p0 = scmp.ne.s32.totalorder %s38_s18, %s3005_s21  ;;  %p3011_p2 = scmp.lt.s32.totalorder %s3005_s21, %s3005_s21 }
   0x8   :  { %p3012_p3 = por %p3011_p2, %p3010_p1 }
   0xa   :  { %p3013_p4 = pnand %p3012_p3, %p3006_p0 }
   0xc   :  { %3016 = shalt.err (!%p3013_p4)
}
   0xd   :  { %s3127_s22 = smov 64   ;;  %s3128_s23 = smov 4  }
   0xe   :  { %43 = dma.hbm_to_vmem [thread:$0]  %s3853_s1, 1024, %s38_s18, [#allocation7], %s3127_s22, %s3127_s22, %s3128_s23  }
   0xf   :  { %s3025_s26 = scalar_lea.vmem %s65_s20, 16  ;;  %s3029_s27 = scalar_lea.vmem %s65_s20, 32 }
  0x10   :  { %p3026_p5 = scmp.ne.s32.totalorder %s65_s20, %s3025_s26  ;;  %p3030_p6 = scmp.lt.s32.totalorder %s65_s20, %s65_s20 }
  0x11   :  { %p3031_p7 = scmp.lt.s32.totalorder %s3029_s27, %s3025_s26 }
  0x13   :  { %p3032_p8 = por %p3031_p7, %p3030_p6 }
  0x15   :  { %p3033_p9 = pnand %p3032_p8, %p3026_p5 }
  0x17   :  { %3036 = shalt.err (!%p3033_p9)
}
  0x18   :  { %67 = dma.hbm_to_vmem [thread:$0]  %s3856_s4, 16, %s65_s20, [#allocation10]  }
  0x19   :  { %s3129_s30 = smov [#allocation3]   ;;  %s3130_s13 = smov [#allocation8]  }
  0x1a   :  { %s25_s12 = sshll.u32 %s3129_s30, 4  ;;  %s49_s14 = sshll.u32 %s3130_s13, 4  ;;  %s26_s12 = int_to_ptr.vmem [resolvable:$true] %s25_s12  ;;  %s50_s14 = int_to_ptr.vmem [resolvable:$true] %s49_s14 }
  0x1b   :  { %s3045_s15 = scalar_lea.vmem %s26_s12, 1024  ;;  %p3050_p11 = scmp.lt.s32.totalorder %s26_s12, %s26_s12 }
  0x1c   :  { %p3046_p10 = scmp.ne.s32.totalorder %s26_s12, %s3045_s15  ;;  %p3051_p12 = scmp.lt.s32.totalorder %s3045_s15, %s3045_s15 }
  0x1e   :  { %p3052_p13 = por %p3051_p12, %p3050_p11 }
  0x20   :  { %p3053_p0 = pnand %p3052_p13, %p3046_p10 }
  0x22   :  { %3056 = shalt.err (!%p3053_p0)
}
  0x23   :  { %31 = dma.hbm_to_vmem [thread:$0]  %s3852_s0, 1024, %s26_s12, [#allocation4], %s3127_s22, %s3127_s22, %s3128_s23  }
  0x24   :  { %s3065_s4 = scalar_lea.vmem %s50_s14, 1024  ;;  %p3070_p2 = scmp.lt.s32.totalorder %s50_s14, %s50_s14 }
  0x25   :  { %p3066_p1 = scmp.ne.s32.totalorder %s50_s14, %s3065_s4  ;;  %p3071_p3 = scmp.lt.s32.totalorder %s3065_s4, %s3065_s4 }
  0x27   :  { %p3072_p4 = por %p3071_p3, %p3070_p2 }
  0x29   :  { %p3073_p5 = pnand %p3072_p4, %p3066_p1 }
  0x2b   :  { %3076 = shalt.err (!%p3073_p5)
}
  0x2c   :  { %55 = dma.hbm_to_vmem [thread:$0]  %s3854_s2, 1024, %s50_s14, [#allocation7], %s3127_s22, %s3127_s22, %s3128_s23  }
  0x2d   :  { %s3131_s19 = smov [#allocation11]  }
  0x2e   :  { %s75_s20 = sshll.u32 %s3131_s19, 4  ;;  %s76_s20 = int_to_ptr.vmem [resolvable:$true] %s75_s20 }
  0x2f   :  { %s3085_s21 = scalar_lea.vmem %s76_s20, 4096  ;;  %p3090_p7 = scmp.lt.s32.totalorder %s76_s20, %s76_s20 }
  0x30   :  { %p3086_p6 = scmp.ne.s32.totalorder %s76_s20, %s3085_s21  ;;  %p3091_p8 = scmp.lt.s32.totalorder %s3085_s21, %s3085_s21 }
  0x32   :  { %p3092_p9 = por %p3091_p8, %p3090_p7 }
  0x34   :  { %p3093_p10 = pnand %p3092_p9, %p3086_p6 }
  0x36   :  { %3096 = shalt.err (!%p3093_p10)
}
  0x37   :  { %s3132_s0 = smov 128   ;;  %s3133_s24 = smov 8  }
  0x38   :  { %81 = dma.hbm_to_vmem [thread:$0]  %s3858_s6, 4096, %s76_s20, [#allocation10], %s3132_s0, %s3132_s0, %s3133_s24  }
  0x39   :  { %3117 = dma.done.wait [#allocation4], 1024  }
  0x3a   :  { %3118 = vsyncadd [#allocation4], 4294966272 }
  0x3b   :  { %3119 = dma.done.wait [#allocation7], 2048  }
  0x3c   :  { %3120 = vsyncadd [#allocation7], 4294965248 }
  0x3d   :  { %3121 = dma.done.wait [#allocation10], 4112  }
  0x3e   :  { %3122 = vsyncadd [#allocation10], 4294963184  ;;  %v2894_v0 = vld [vmem:[#allocation8 + $0x38] sm:$0xff]   ;;  %v2895_v1 = vld [vmem:[#allocation8 + $0x30] sm:$0xff]   ;;  %v3134_v16 = vmov 0.0   ;;  %vm3135_vm0 = vmmov 0  }
  0x3f   :  { %2575 = vmatprep.subr.bf16.mxu0 %v2894_v0  ;;  %v2896_v2 = vld [vmem:[#allocation8 + $0x28] sm:$0xff]   ;;  %v2897_v3 = vld [vmem:[#allocation8 + $0x20] sm:$0xff]   ;;  %v2898_v5 = vld [vmem:[#allocation8 + $0x18] sm:$0xff]   ;;  %2607 = vmatprep.subr.mxu1 %v3134_v16 }
  0x40   :  { %2576 = vmatpush3.bf16.msra.mxu0 %v2894_v0  ;;  %v2902_v4 = vld [vmem:[#allocation3] sm:$0xff]   ;;  %v2899_v6 = vld [vmem:[#allocation8 + $0x10] sm:$0xff]   ;;  %v2900_v7 = vld [vmem:[#allocation8 + $0x8] sm:$0xff]   ;;  %2639 = vmatprep.mubr.msk.f32.mxu1 %vm3135_vm0, %v3134_v16 }
  0x41   :  { %2577 = vmatprep.subr.bf16.mxu0 %v2895_v1  ;;  %2591 = vmatprep.mubr.bf16.mxu0 %v2902_v4  ;;  %v2901_v8 = vld [vmem:[#allocation8] sm:$0xff]   ;;  %v2903_v9 = vld [vmem:[#allocation3 + $0x8] sm:$0xff]   ;;  %v2904_v10 = vld [vmem:[#allocation3 + $0x10] sm:$0xff]  }
  0x42   :  { %v2905_v11 = vld [vmem:[#allocation3 + $0x18] sm:$0xff]   ;;  %v2906_v12 = vld [vmem:[#allocation3 + $0x20] sm:$0xff]   ;;  %v2907_v13 = vld [vmem:[#allocation3 + $0x28] sm:$0xff]  }
  0x43   :  { %v2908_v14 = vld [vmem:[#allocation3 + $0x30] sm:$0xff]   ;;  %v2909_v15 = vld [vmem:[#allocation3 + $0x38] sm:$0xff]   ;;  %v3244_v31 = vld [vmem:[%s3855_s3] ss:$0 sm:$0xff] }
  0x44   :  { %2578 = vmatpush3.bf16.msra.mxu0 %v2895_v1  ;;  %v3374_v1 = vld [vmem:[%s3862_s10] sm:$0x1]  ;;  %v2910_v4 = vld [vmem:[#allocation11 + $0x70] ss:$8 sps:$4 sm:$0xff]  }
  0x45   :  { %2579 = vmatprep.subr.bf16.mxu0 %v2896_v2 }
  0x48   :  { %2580 = vmatpush3.bf16.msra.mxu0 %v2896_v2 }
  0x49   :  { %2581 = vmatprep.subr.bf16.mxu0 %v2897_v3 }
  0x4c   :  { %2582 = vmatpush3.bf16.msra.mxu0 %v2897_v3  ;;  %v2912_v3 = vld [vmem:[#allocation11 + $0x74] ss:$8 sps:$4 sm:$0xff]  }
  0x4d   :  { %2583 = vmatprep.subr.bf16.mxu0 %v2898_v5 }
  0x50   :  { %2584 = vmatpush3.bf16.msra.mxu0 %v2898_v5  ;;  %v2915_v5 = vld [vmem:[#allocation11 + $0x64] ss:$8 sps:$4 sm:$0xff]  }
  0x51   :  { %2585 = vmatprep.subr.bf16.mxu0 %v2899_v6 }
  0x54   :  { %2586 = vmatpush3.bf16.msra.mxu0 %v2899_v6  ;;  %v2913_v6 = vld [vmem:[#allocation11 + $0x60] ss:$8 sps:$4 sm:$0xff]  }
  0x55   :  { %2587 = vmatprep.subr.bf16.mxu0 %v2900_v7 }
  0x58   :  { %2588 = vmatpush3.bf16.msra.mxu0 %v2900_v7  ;;  %v2918_v7 = vld [vmem:[#allocation11 + $0x54] ss:$8 sps:$4 sm:$0xff]  }
  0x59   :  { %2589 = vmatprep.subr.bf16.mxu0 %v2901_v8 }
  0x5c   :  { %2590 = vmatpush3.bf16.msra.mxu0 %v2901_v8  ;;  %v2916_v8 = vld [vmem:[#allocation11 + $0x50] ss:$8 sps:$4 sm:$0xff]  }
  0x5d   :  { %2642 = vmatprep.subr.mxu0 %v3134_v16 }
  0x5f   :  { %2592 = vmatmul.mubr.bf16.vlgmr.msra.gmra.mxu0 %v2903_v9  ;;  %v2921_v9 = vld [vmem:[#allocation11 + $0x44] ss:$8 sps:$4 sm:$0xff]  }
  0x60   :  { %2595 = vmatprep.mubr.bf16.mxu0 %v2904_v10  ;;  %v2919_v10 = vld [vmem:[#allocation11 + $0x40] ss:$8 sps:$4 sm:$0xff]  }
  0x67   :  { %2596 = vmatmul.mubr.bf16.gmra.mxu0 %v2905_v11  ;;  %v2924_v11 = vld [vmem:[#allocation11 + $0x34] ss:$8 sps:$4 sm:$0xff]  }
  0x68   :  { %2599 = vmatprep.mubr.bf16.mxu0 %v2906_v12  ;;  %v2922_v12 = vld [vmem:[#allocation11 + $0x30] ss:$8 sps:$4 sm:$0xff]  }
  0x6f   :  { %2600 = vmatmul.mubr.bf16.gmra.mxu0 %v2907_v13  ;;  %v2927_v13 = vld [vmem:[#allocation11 + $0x24] ss:$8 sps:$4 sm:$0xff]  }
  0x70   :  { %2603 = vmatprep.mubr.bf16.mxu0 %v2908_v14  ;;  %v2925_v14 = vld [vmem:[#allocation11 + $0x20] ss:$8 sps:$4 sm:$0xff]  }
  0x77   :  { %2604 = vmatmul.mubr.bf16.gmra.mxu0 %v2909_v15  ;;  %v2930_v15 = vld [vmem:[#allocation11 + $0x14] ss:$8 sps:$4 sm:$0xff]  }
  0x78   :  { %2674 = vmatprep.mubr.msk.f32.mxu0 %vm3135_vm0, %v3134_v16 }
 0x11f   :  { %v3231_v17 = vpop.f32.mrf.mxu0 }
 0x120   :  { %v3343_v58 = vadd.f32 %v3231_v17, %v3244_v31  ;;  %v3136_v17 = vmov 0  }
 0x121   :  { %v3233_v18 = vpop.f32.mrf.mxu0 }
 0x122   :  { %v413_v62 = vmul.f32 %v3343_v58, %v3343_v58  ;;  %v3363_v63 = vadd.f32 %v3244_v31, %v3233_v18  ;;  %v2928_v18 = vld [vmem:[#allocation11 + $0x10] ss:$8 sps:$4 sm:$0xff]  }
 0x123   :  { %v3235_v19 = vpop.f32.mrf.mxu0 }
 0x124   :  { %v3334_v56 = vadd.f32 %v3235_v19, %v3244_v31  ;;  %v411_v2 = vmul.f32 %v3363_v63, %v3363_v63  ;;  %v2933_v19 = vld [vmem:[#allocation11 + $0x4] ss:$8 sps:$4 sm:$0xff]  }
 0x125   :  { %v3237_v20 = vpop.f32.mrf.mxu0 }
 0x126   :  { %v414_v60 = vmul.f32 %v3334_v56, %v3334_v56  ;;  %v3354_v61 = vadd.f32 %v3244_v31, %v3237_v20  ;;  %v2931_v20 = vld [vmem:[#allocation11] ss:$8 sps:$4 sm:$0xff]  }
 0x127   :  { %v2597_v21 = vpop.f32.mrf.mxu0 }
 0x128   :  { %v3308_v50 = vadd.f32 %v2597_v21, %v3244_v31  ;;  %v412_v0 = vmul.f32 %v3354_v61, %v3354_v61 }
 0x129   :  { %v3239_v22 = vpop.f32.mrf.mxu0 }
 0x12a   :  { %v417_v54 = vmul.f32 %v3308_v50, %v3308_v50  ;;  %v3327_v55 = vadd.f32 %v3244_v31, %v3239_v22 }
 0x12b   :  { %v2598_v23 = vpop.f32.mrf.mxu0 }
 0x12c   :  { %v3300_v48 = vadd.f32 %v2598_v23, %v3244_v31  ;;  %v415_v59 = vmul.f32 %v3327_v55, %v3327_v55 }
 0x12d   :  { %v295_v24 = vpop.f32.mrf.mxu0 }
 0x12e   :  { %v418_v52 = vmul.f32 %v3300_v48, %v3300_v48  ;;  %v3318_v53 = vadd.f32 %v3244_v31, %v295_v24 }
 0x12f   :  { %v2601_v25 = vpop.f32.mrf.mxu0 }
 0x130   :  { %v3276_v42 = vadd.f32 %v2601_v25, %v3244_v31  ;;  %v416_v57 = vmul.f32 %v3318_v53, %v3318_v53 }
 0x131   :  { %v308_v26 = vpop.f32.mrf.mxu0 }
 0x132   :  { %v421_v46 = vmul.f32 %v3276_v42, %v3276_v42  ;;  %v3294_v47 = vadd.f32 %v3244_v31, %v308_v26 }
 0x133   :  { %v2602_v27 = vpop.f32.mrf.mxu0 }
 0x134   :  { %v3268_v40 = vadd.f32 %v2602_v27, %v3244_v31  ;;  %v419_v51 = vmul.f32 %v3294_v47, %v3294_v47 }
 0x135   :  { %v311_v28 = vpop.f32.mrf.mxu0 }
 0x136   :  { %v422_v44 = vmul.f32 %v3268_v40, %v3268_v40  ;;  %v3286_v45 = vadd.f32 %v3244_v31, %v311_v28 }
 0x137   :  { %v2605_v29 = vpop.f32.mrf.mxu0 }
 0x138   :  { %v3247_v33 = vadd.f32 %v2605_v29, %v3244_v31  ;;  %v420_v49 = vmul.f32 %v3286_v45, %v3286_v45 }
 0x139   :  { %v324_v30 = vpop.f32.mrf.mxu0 }
 0x13a   :  { %v425_v38 = vmul.f32 %v3247_v33, %v3247_v33  ;;  %v3262_v39 = vadd.f32 %v3244_v31, %v324_v30  ;;  %v507_v30 = vlaneseq }
 0x13b   :  { %v2606_v32 = vpop.f32.mrf.mxu0 }
 0x13c   :  { %v3250_v34 = vadd.f32 %v2606_v32, %v3244_v31  ;;  %v423_v43 = vmul.f32 %v3262_v39, %v3262_v39  ;;  %v339_v32 = vld [vmem:[#allocation9] sm:$0x1] }
 0x13d   :  { %v327_v35 = vpop.f32.mrf.mxu0 }
 0x13e   :  { %v426_v36 = vmul.f32 %v3250_v34, %v3250_v34  ;;  %v3255_v37 = vadd.f32 %v3244_v31, %v327_v35  ;;  %2608 = vmatpush3.msra.mxu1 %v3250_v34  ;;  %v508_v31 = vshrl.u32 %v507_v30, 7 }
 0x13f   :  { %2609 = vmatprep.subr.mxu1 %v3134_v16 }
 0x140   :  { %2610 = vmatpush3.msra.mxu1 %v3247_v33  ;;  %2643 = vmatpush3.msra.mxu0 %v426_v36  ;;  %v424_v41 = vmul.f32 %v3255_v37, %v3255_v37  ;;  %v3386_v35 = vsub.s32 0, %v508_v31 }
 0x141   :  { %2611 = vmatprep.subr.mxu1 %v3134_v16  ;;  %2644 = vmatprep.subr.mxu0 %v3134_v16 }
 0x142   :  { %2612 = vmatpush3.msra.mxu1 %v3255_v37  ;;  %2645 = vmatpush3.msra.mxu0 %v425_v38 }
 0x143   :  { %2613 = vmatprep.subr.mxu1 %v3134_v16  ;;  %2646 = vmatprep.subr.mxu0 %v3134_v16 }
 0x144   :  { %2614 = vmatpush3.msra.mxu1 %v3262_v39  ;;  %2647 = vmatpush3.msra.mxu0 %v424_v41  ;;  %v340_v41 = vld [vmem:[%s3857_s5] sm:$0x1] }
 0x145   :  { %2615 = vmatprep.subr.mxu1 %v3134_v16  ;;  %2648 = vmatprep.subr.mxu0 %v3134_v16 }
 0x146   :  { %2616 = vmatpush3.msra.mxu1 %v3268_v40  ;;  %2649 = vmatpush3.msra.mxu0 %v423_v43 }
 0x147   :  { %2617 = vmatprep.subr.mxu1 %v3134_v16  ;;  %2650 = vmatprep.subr.mxu0 %v3134_v16 }
 0x148   :  { %2618 = vmatpush3.msra.mxu1 %v3276_v42  ;;  %2651 = vmatpush3.msra.mxu0 %v422_v44 }
 0x149   :  { %2619 = vmatprep.subr.mxu1 %v3134_v16  ;;  %2652 = vmatprep.subr.mxu0 %v3134_v16 }
 0x14a   :  { %2620 = vmatpush3.msra.mxu1 %v3286_v45  ;;  %2653 = vmatpush3.msra.mxu0 %v421_v46 }
 0x14b   :  { %2621 = vmatprep.subr.mxu1 %v3134_v16  ;;  %2654 = vmatprep.subr.mxu0 %v3134_v16 }
 0x14c   :  { %2622 = vmatpush3.msra.mxu1 %v3294_v47  ;;  %2655 = vmatpush3.msra.mxu0 %v420_v49 }
 0x14d   :  { %2623 = vmatprep.subr.mxu1 %v3134_v16  ;;  %2656 = vmatprep.subr.mxu0 %v3134_v16 }
 0x14e   :  { %2624 = vmatpush3.msra.mxu1 %v3300_v48  ;;  %2657 = vmatpush3.msra.mxu0 %v419_v51 }
 0x14f   :  { %2625 = vmatprep.subr.mxu1 %v3134_v16  ;;  %2658 = vmatprep.subr.mxu0 %v3134_v16 }
 0x150   :  { %2626 = vmatpush3.msra.mxu1 %v3308_v50  ;;  %2659 = vmatpush3.msra.mxu0 %v418_v52 }
 0x151   :  { %2627 = vmatprep.subr.mxu1 %v3134_v16  ;;  %2660 = vmatprep.subr.mxu0 %v3134_v16 }
 0x152   :  { %2628 = vmatpush3.msra.mxu1 %v3318_v53  ;;  %2661 = vmatpush3.msra.mxu0 %v417_v54 }
 0x153   :  { %2629 = vmatprep.subr.mxu1 %v3134_v16  ;;  %2662 = vmatprep.subr.mxu0 %v3134_v16 }
 0x154   :  { %2630 = vmatpush3.msra.mxu1 %v3327_v55  ;;  %2663 = vmatpush3.msra.mxu0 %v416_v57 }
 0x155   :  { %2631 = vmatprep.subr.mxu1 %v3134_v16  ;;  %2664 = vmatprep.subr.mxu0 %v3134_v16 }
 0x156   :  { %2632 = vmatpush3.msra.mxu1 %v3334_v56  ;;  %2665 = vmatpush3.msra.mxu0 %v415_v59 }
 0x157   :  { %2633 = vmatprep.subr.mxu1 %v3134_v16  ;;  %2666 = vmatprep.subr.mxu0 %v3134_v16 }
 0x158   :  { %2634 = vmatpush3.msra.mxu1 %v3343_v58  ;;  %2667 = vmatpush3.msra.mxu0 %v414_v60 }
 0x159   :  { %2635 = vmatprep.subr.mxu1 %v3134_v16  ;;  %2668 = vmatprep.subr.mxu0 %v3134_v16 }
 0x15a   :  { %2636 = vmatpush3.msra.mxu1 %v3354_v61  ;;  %2669 = vmatpush3.msra.mxu0 %v413_v62 }
 0x15b   :  { %2637 = vmatprep.subr.mxu1 %v3134_v16  ;;  %2670 = vmatprep.subr.mxu0 %v3134_v16 }
 0x15c   :  { %2638 = vmatpush3.msra.mxu1 %v3363_v63  ;;  %2671 = vmatpush3.msra.mxu0 %v412_v0 }
 0x15d   :  { %2640 = vmatmul.mubr.f32.vlgmr.msra.gmra.mxu1 %v3374_v1  ;;  %2672 = vmatprep.subr.mxu0 %v3134_v16 }
 0x15e   :  { %2673 = vmatpush3.msra.mxu0 %v411_v2  ;;  %806 = vmatprep.subr.bf16.mxu1 %v2912_v3 }
 0x15f   :  { %2675 = vmatmul.mubr.f32.vlgmr.msra.gmra.mxu0 %v3374_v1  ;;  %807 = vmatpush1.bf16.msra.mxu1 %v2910_v4 }
 0x160   :  { %808 = vmatprep.subr.bf16.mxu1 %v2915_v5  ;;  %838 = vmatprep.mubr.bf16.mxu1 %v3136_v17 }
 0x163   :  { %809 = vmatpush1.bf16.msra.mxu1 %v2913_v6 }
 0x164   :  { %810 = vmatprep.subr.bf16.mxu1 %v2918_v7 }
 0x167   :  { %811 = vmatpush1.bf16.msra.mxu1 %v2916_v8 }
 0x168   :  { %812 = vmatprep.subr.bf16.mxu1 %v2921_v9 }
 0x16b   :  { %813 = vmatpush1.bf16.msra.mxu1 %v2919_v10 }
 0x16c   :  { %814 = vmatprep.subr.bf16.mxu1 %v2924_v11 }
 0x16f   :  { %815 = vmatpush1.bf16.msra.mxu1 %v2922_v12 }
 0x170   :  { %816 = vmatprep.subr.bf16.mxu1 %v2927_v13 }
 0x173   :  { %817 = vmatpush1.bf16.msra.mxu1 %v2925_v14 }
 0x174   :  { %818 = vmatprep.subr.bf16.mxu1 %v2930_v15 }
 0x177   :  { %819 = vmatpush1.bf16.msra.mxu1 %v2928_v18 }
 0x178   :  { %820 = vmatprep.subr.bf16.mxu1 %v2933_v19 }
 0x17b   :  { %821 = vmatpush1.bf16.msra.mxu1 %v2931_v20 }
 0x17c   :  { %2744 = vmatprep.subr.mxu1 %v3134_v16 }
 0x21d   :  { %v407_v21 = vpop.f32.mrf.mxu1 }
 0x21e   :  { %v497_v22 = vmul.f32 0.125, %v407_v21 }
 0x21f   :  { %v2641_v23 = vpop.f32.mrf.mxu1  ;;  %v493_v24 = vpop.f32.mrf.mxu0 }
 0x220   :  { %v499_v25 = vmul.f32 %v497_v22, %v497_v22  ;;  %v498_v26 = vmul.f32 0.125, %v493_v24 }
 0x221   :  { %v2676_v27 = vpop.f32.mrf.mxu0 }
 0x222   :  { %v500_v28 = vsub.f32 %v498_v26, %v499_v25 }
 0x224   :  { %v501_v29 = vadd.f32 1e-05, %v500_v28 }
 0x226   :  { %2990 = vrsqrt.f32 %v501_v29 }
 0x233   :  { %v2991_v36 = vpop.eup %2990 }
 0x234   :  { %v503_v38 = vmul.f32 %v2991_v36, %v339_v32 }
 0x236   :  { %v504_v43 = vmul.f32 %v503_v38, %v497_v22  ;;  %v510_v44 = vrot.slane %v503_v38, %v3386_v35 }
 0x238   :  { %v505_v46 = vsub.f32 %v340_v41, %v504_v43  ;;  %v512_v49 = vmul.f32 %v510_v44, %v3363_v63  ;;  %v513_v51 = vmul.f32 %v510_v44, %v3354_v61  ;;  %v514_v52 = vmul.f32 %v510_v44, %v3343_v58 }
 0x239   :  { %v515_v54 = vmul.f32 %v510_v44, %v3334_v56  ;;  %v516_v57 = vmul.f32 %v510_v44, %v3327_v55  ;;  %v517_v59 = vmul.f32 %v510_v44, %v3318_v53  ;;  %v518_v60 = vmul.f32 %v510_v44, %v3308_v50 }
 0x23a   :  { %v532_v62 = vrot.slane %v505_v46, %v3386_v35  ;;  %v519_v0 = vmul.f32 %v510_v44, %v3300_v48  ;;  %v520_v2 = vmul.f32 %v510_v44, %v3294_v47  ;;  %v521_v63 = vmul.f32 %v510_v44, %v3286_v45 }
 0x23b   :  { %v522_v61 = vmul.f32 %v510_v44, %v3276_v42  ;;  %v523_v58 = vmul.f32 %v510_v44, %v3268_v40  ;;  %v524_v56 = vmul.f32 %v510_v44, %v3262_v39  ;;  %v525_v55 = vmul.f32 %v510_v44, %v3255_v37 }
 0x23c   :  { %v534_v3 = vadd.f32 %v532_v62, %v512_v49  ;;  %v535_v53 = vadd.f32 %v532_v62, %v513_v51  ;;  %v536_v4 = vadd.f32 %v532_v62, %v514_v52  ;;  %v537_v50 = vadd.f32 %v532_v62, %v515_v54 }
 0x23d   :  { %v538_v5 = vadd.f32 %v532_v62, %v516_v57  ;;  %v539_v6 = vadd.f32 %v532_v62, %v517_v59  ;;  %v540_v7 = vadd.f32 %v532_v62, %v518_v60  ;;  %v541_v48 = vadd.f32 %v532_v62, %v519_v0  ;;  %v2942_v59 = vld [vmem:[#allocation6] sm:$0xff]  }
 0x23e   :  { %v550_v8 = vmax.f32 %v534_v3, 0.0  ;;  %v551_v47 = vmax.f32 %v535_v53, 0.0  ;;  %v552_v9 = vmax.f32 %v536_v4, 0.0  ;;  %v553_v45 = vmax.f32 %v537_v50, 0.0  ;;  %2693 = vmatprep.mubr.bf16.mxu0 %v2942_v59 }
 0x23f   :  { %v554_v10 = vmax.f32 %v538_v5, 0.0  ;;  %v555_v42 = vmax.f32 %v539_v6, 0.0  ;;  %v556_v11 = vmax.f32 %v540_v7, 0.0  ;;  %v557_v40 = vmax.f32 %v541_v48, 0.0 }
 0x240   :  { %v2334_v12 = vpack.c.bf16 %v551_v47, %v550_v8  ;;  %v2339_v39 = vpack.c.bf16 %v553_v45, %v552_v9  ;;  %v542_v13 = vadd.f32 %v532_v62, %v520_v2  ;;  %v543_v37 = vadd.f32 %v532_v62, %v521_v63 }
 0x241   :  { %v2344_v14 = vpack.c.bf16 %v555_v42, %v554_v10  ;;  %v2349_v15 = vpack.c.bf16 %v557_v40, %v556_v11  ;;  %v544_v18 = vadd.f32 %v532_v62, %v522_v61  ;;  %v545_v19 = vadd.f32 %v532_v62, %v523_v58 }
 0x242   :  { %2335 = vst [vmem:[#allocation2] sm:$0xff] %v2334_v12   ;;  %2411 = vst [vmem:[#allocation2 + $0x8] sm:$0xff] %v2339_v39   ;;  %v558_v20 = vmax.f32 %v542_v13, 0.0  ;;  %v559_v21 = vmax.f32 %v543_v37, 0.0  ;;  %v546_v22 = vadd.f32 %v532_v62, %v524_v56  ;;  %v547_v23 = vadd.f32 %v532_v62, %v525_v55 }
 0x243   :  { %2412 = vst [vmem:[#allocation2 + $0x10] sm:$0xff] %v2344_v14   ;;  %2413 = vst [vmem:[#allocation2 + $0x18] sm:$0xff] %v2349_v15   ;;  %v560_v24 = vmax.f32 %v544_v18, 0.0  ;;  %v561_v25 = vmax.f32 %v545_v19, 0.0  ;;  %v526_v26 = vmul.f32 %v510_v44, %v3247_v33  ;;  %v527_v27 = vmul.f32 %v510_v44, %v3250_v34 }
 0x244   :  { %v2354_v28 = vpack.c.bf16 %v559_v21, %v558_v20  ;;  %v562_v29 = vmax.f32 %v546_v22, 0.0  ;;  %v563_v30 = vmax.f32 %v547_v23, 0.0 }
 0x245   :  { %v2359_v31 = vpack.c.bf16 %v561_v25, %v560_v24  ;;  %v548_v32 = vadd.f32 %v532_v62, %v526_v26  ;;  %v549_v36 = vadd.f32 %v532_v62, %v527_v27  ;;  %v2943_v27 = vld [vmem:[#allocation6 + $0x8] sm:$0xff]  }
 0x246   :  { %2414 = vst [vmem:[#allocation2 + $0x20] sm:$0xff] %v2354_v28   ;;  %v2364_v38 = vpack.c.bf16 %v563_v30, %v562_v29  ;;  %v2944_v28 = vld [vmem:[#allocation6 + $0x10] sm:$0xff]   ;;  %v2945_v29 = vld [vmem:[#allocation6 + $0x18] sm:$0xff]   ;;  %v2946_v30 = vld [vmem:[#allocation6 + $0x20] sm:$0xff]  }
 0x247   :  { %2415 = vst [vmem:[#allocation2 + $0x28] sm:$0xff] %v2359_v31   ;;  %v564_v41 = vmax.f32 %v548_v32, 0.0  ;;  %v565_v43 = vmax.f32 %v549_v36, 0.0  ;;  %v2947_v31 = vld [vmem:[#allocation6 + $0x28] sm:$0xff]   ;;  %v2948_v32 = vld [vmem:[#allocation6 + $0x30] sm:$0xff]   ;;  %v2949_v36 = vld [vmem:[#allocation6 + $0x38] sm:$0xff]  }
 0x248   :  { %2416 = vst [vmem:[#allocation2 + $0x30] sm:$0xff] %v2364_v38  }
 0x249   :  { %v2934_v46 = vld [vmem:[#allocation2] sm:$0xff]   ;;  %v2369_v49 = vpack.c.bf16 %v565_v43, %v564_v41  ;;  %v2935_v33 = vld [vmem:[#allocation2 + $0x8] sm:$0xff]  }
 0x24a   :  { %839 = vmatmul.mubr.bf16.vlgmr.msra.gmra.mxu1 %v2934_v46  ;;  %v2936_v34 = vld [vmem:[#allocation2 + $0x10] sm:$0xff]   ;;  %v2937_v44 = vld [vmem:[#allocation2 + $0x18] sm:$0xff]  }
 0x24b   :  { %2417 = vst [vmem:[#allocation2 + $0x38] sm:$0xff] %v2369_v49   ;;  %848 = vmatprep.mubr.bf16.mxu1 %v3136_v17 }
 0x24d   :  { %v2938_v51 = vld [vmem:[#allocation2 + $0x20] sm:$0xff]  }
 0x24e   :  { %v2939_v52 = vld [vmem:[#allocation2 + $0x28] sm:$0xff]  }
 0x24f   :  { %v2940_v54 = vld [vmem:[#allocation2 + $0x30] sm:$0xff]  }
 0x252   :  { %849 = vmatmul.mubr.bf16.gmra.mxu1 %v2935_v33  ;;  %v2941_v57 = vld [vmem:[#allocation2 + $0x38] sm:$0xff]  }
 0x253   :  { %858 = vmatprep.mubr.bf16.mxu1 %v3136_v17 }
 0x25a   :  { %859 = vmatmul.mubr.bf16.gmra.mxu1 %v2936_v34 }
 0x25b   :  { %868 = vmatprep.mubr.bf16.mxu1 %v3136_v17 }
 0x262   :  { %869 = vmatmul.mubr.bf16.gmra.mxu1 %v2937_v44 }
 0x263   :  { %878 = vmatprep.mubr.bf16.mxu1 %v3136_v17 }
 0x26a   :  { %879 = vmatmul.mubr.bf16.gmra.mxu1 %v2938_v51 }
 0x26b   :  { %888 = vmatprep.mubr.bf16.mxu1 %v3136_v17 }
 0x272   :  { %889 = vmatmul.mubr.bf16.gmra.mxu1 %v2939_v52 }
 0x273   :  { %898 = vmatprep.mubr.bf16.mxu1 %v3136_v17 }
 0x27a   :  { %899 = vmatmul.mubr.bf16.gmra.mxu1 %v2940_v54 }
 0x27b   :  { %908 = vmatprep.mubr.bf16.mxu1 %v3136_v17 }
 0x282   :  { %909 = vmatmul.mubr.bf16.gmra.mxu1 %v2941_v57 }
 0x283   :  { %2776 = vmatprep.mubr.msk.f32.mxu1 %vm3135_vm0, %v3134_v16 }
 0x30a   :  { %v3418_v60 = vpop.f32.mrf.mxu1 }
 0x30c   :  { %v842_v62 = vpop.f32.mrf.mxu1 }
 0x30e   :  { %v3420_v0 = vpop.f32.mrf.mxu1 }
 0x310   :  { %v846_v2 = vpop.f32.mrf.mxu1 }
 0x311   :  { %v919_v63 = vpack.c.bf16 %v846_v2, %v842_v62  ;;  %v3464_v62 = vld [vmem:[%s3859_s7] ss:$0 sm:$0xff] }
 0x312   :  { %v3422_v61 = vpop.f32.mrf.mxu1 }
 0x314   :  { %v852_v58 = vpop.f32.mrf.mxu1 }
 0x316   :  { %v3424_v56 = vpop.f32.mrf.mxu1 }
 0x318   :  { %v856_v55 = vpop.f32.mrf.mxu1 }
 0x319   :  { %v920_v3 = vpack.c.bf16 %v856_v55, %v852_v58 }
 0x31a   :  { %v3426_v53 = vpop.f32.mrf.mxu1 }
 0x31c   :  { %v862_v4 = vpop.f32.mrf.mxu1 }
 0x31e   :  { %v3428_v50 = vpop.f32.mrf.mxu1 }
 0x320   :  { %v866_v5 = vpop.f32.mrf.mxu1 }
 0x321   :  { %v921_v26 = vpack.c.bf16 %v866_v5, %v862_v4 }
 0x322   :  { %v3430_v6 = vpop.f32.mrf.mxu1 }
 0x324   :  { %v872_v7 = vpop.f32.mrf.mxu1 }
 0x326   :  { %v3432_v48 = vpop.f32.mrf.mxu1 }
 0x328   :  { %v876_v8 = vpop.f32.mrf.mxu1 }
 0x329   :  { %v922_v25 = vpack.c.bf16 %v876_v8, %v872_v7 }
 0x32a   :  { %v3434_v47 = vpop.f32.mrf.mxu1 }
 0x32c   :  { %v882_v9 = vpop.f32.mrf.mxu1 }
 0x32e   :  { %v3436_v45 = vpop.f32.mrf.mxu1 }
 0x330   :  { %v886_v10 = vpop.f32.mrf.mxu1 }
 0x331   :  { %v923_v24 = vpack.c.bf16 %v886_v10, %v882_v9 }
 0x332   :  { %v3438_v42 = vpop.f32.mrf.mxu1 }
 0x334   :  { %v892_v11 = vpop.f32.mrf.mxu1 }
 0x336   :  { %v3440_v40 = vpop.f32.mrf.mxu1 }
 0x338   :  { %v896_v12 = vpop.f32.mrf.mxu1 }
 0x339   :  { %v924_v23 = vpack.c.bf16 %v896_v12, %v892_v11  ;;  %v1106_v11 = vadd.f32 %v3464_v62, %v3440_v40 }
 0x33a   :  { %v3442_v39 = vpop.f32.mrf.mxu1 }
 0x33b   :  { %v1107_v8 = vadd.f32 %v3464_v62, %v3442_v39  ;;  %v1105_v39 = vadd.f32 %v3464_v62, %v3438_v42 }
 0x33c   :  { %v902_v13 = vpop.f32.mrf.mxu1 }
 0x33e   :  { %v904_v37 = vpop.f32.mrf.mxu1 }
 0x340   :  { %v906_v14 = vpop.f32.mrf.mxu1 }
 0x341   :  { %v925_v22 = vpack.c.bf16 %v906_v14, %v902_v13  ;;  %v1104_v14 = vadd.f32 %v3464_v62, %v3436_v45  ;;  %v1102_v45 = vadd.f32 %v3464_v62, %v3432_v48 }
 0x342   :  { %v910_v15 = vpop.f32.mrf.mxu1 }
 0x344   :  { %v912_v18 = vpop.f32.mrf.mxu1 }
 0x346   :  { %v914_v19 = vpop.f32.mrf.mxu1 }
 0x347   :  { %v1110_v58 = vadd.f32 %v3464_v62, %v914_v19 }
 0x348   :  { %v916_v20 = vpop.f32.mrf.mxu1 }
 0x349   :  { %v926_v21 = vpack.c.bf16 %v916_v20, %v912_v18  ;;  %v1103_v18 = vadd.f32 %v3464_v62, %v3434_v47  ;;  %v1101_v47 = vadd.f32 %v3464_v62, %v3430_v6 }
 0x34b   :  { %2677 = vmatprep.subr.bf16.mxu0 %v926_v21 }
 0x34c   :  { %2678 = vmatpush3.bf16.msra.mxu0 %v926_v21 }
 0x34d   :  { %2679 = vmatprep.subr.bf16.mxu0 %v925_v22 }
 0x350   :  { %2680 = vmatpush3.bf16.msra.mxu0 %v925_v22 }
 0x351   :  { %2681 = vmatprep.subr.bf16.mxu0 %v924_v23 }
 0x354   :  { %2682 = vmatpush3.bf16.msra.mxu0 %v924_v23 }
 0x355   :  { %2683 = vmatprep.subr.bf16.mxu0 %v923_v24 }
 0x358   :  { %2684 = vmatpush3.bf16.msra.mxu0 %v923_v24  ;;  %v1100_v24 = vadd.f32 %v3464_v62, %v3428_v50 }
 0x359   :  { %2685 = vmatprep.subr.bf16.mxu0 %v922_v25 }
 0x35c   :  { %2686 = vmatpush3.bf16.msra.mxu0 %v922_v25 }
 0x35d   :  { %2687 = vmatprep.subr.bf16.mxu0 %v921_v26 }
 0x360   :  { %2688 = vmatpush3.bf16.msra.mxu0 %v921_v26  ;;  %v1099_v26 = vadd.f32 %v3464_v62, %v3426_v53 }
 0x361   :  { %2689 = vmatprep.subr.bf16.mxu0 %v920_v3 }
 0x364   :  { %2690 = vmatpush3.bf16.msra.mxu0 %v920_v3  ;;  %v1108_v3 = vadd.f32 %v3464_v62, %v904_v37 }
 0x365   :  { %2691 = vmatprep.subr.bf16.mxu0 %v919_v63 }
 0x368   :  { %2692 = vmatpush3.bf16.msra.mxu0 %v919_v63  ;;  %v1109_v63 = vadd.f32 %v3464_v62, %v910_v15 }
 0x369   :  { %2709 = vmatprep.subr.mxu0 %v3134_v16 }
 0x36b   :  { %2694 = vmatmul.mubr.bf16.vlgmr.msra.gmra.mxu0 %v2943_v27 }
 0x36c   :  { %2697 = vmatprep.mubr.bf16.mxu0 %v2944_v28  ;;  %v1098_v28 = vadd.f32 %v3464_v62, %v3424_v56 }
 0x373   :  { %2698 = vmatmul.mubr.bf16.gmra.mxu0 %v2945_v29 }
 0x374   :  { %2701 = vmatprep.mubr.bf16.mxu0 %v2946_v30  ;;  %v1097_v30 = vadd.f32 %v3464_v62, %v3422_v61 }
 0x37b   :  { %2702 = vmatmul.mubr.bf16.gmra.mxu0 %v2947_v31 }
 0x37c   :  { %2705 = vmatprep.mubr.bf16.mxu0 %v2948_v32  ;;  %v1096_v32 = vadd.f32 %v3464_v62, %v3420_v0 }
 0x383   :  { %2706 = vmatmul.mubr.bf16.gmra.mxu0 %v2949_v36 }
 0x384   :  { %2741 = vmatprep.mubr.msk.f32.mxu0 %vm3135_vm0, %v3134_v16 }
 0x42b   :  { %v3447_v38 = vpop.f32.mrf.mxu0 }
 0x42c   :  { %v3578_v36 = vadd.f32 %v3447_v38, %v1097_v30 }
 0x42d   :  { %v3449_v41 = vpop.f32.mrf.mxu0 }
 0x42e   :  { %v1201_v38 = vmul.f32 %v3578_v36, %v3578_v36 }
 0x42f   :  { %v3451_v43 = vpop.f32.mrf.mxu0 }
 0x430   :  { %v3568_v31 = vadd.f32 %v3451_v43, %v1098_v28  ;;  %v1095_v43 = vadd.f32 %v3464_v62, %v3418_v60  ;;  %v2964_v62 = vld [vmem:[#allocation11 + $0xb4] ss:$8 sps:$4 sm:$0xff]  }
 0x431   :  { %v3453_v46 = vpop.f32.mrf.mxu0 }
 0x432   :  { %v3590_v0 = vadd.f32 %v1096_v32, %v3453_v46  ;;  %v2952_v46 = vld [vmem:[#allocation11 + $0xf4] ss:$8 sps:$4 sm:$0xff]  }
 0x433   :  { %v3455_v49 = vpop.f32.mrf.mxu0 }
 0x434   :  { %v3538_v25 = vadd.f32 %v3455_v49, %v1101_v47  ;;  %v1202_v49 = vmul.f32 %v3568_v31, %v3568_v31  ;;  %v1200_v60 = vmul.f32 %v3590_v0, %v3590_v0  ;;  %v1128_v47 = vld [vmem:[%s3861_s9] sm:$0x1] }
 0x435   :  { %v3457_v33 = vpop.f32.mrf.mxu0 }
 0x436   :  { %v1205_v29 = vmul.f32 %v3538_v25, %v3538_v25  ;;  %v3560_v53 = vadd.f32 %v1099_v26, %v3457_v33  ;;  %v3598_v33 = vadd.f32 %v1095_v43, %v3449_v41 }
 0x437   :  { %v2700_v34 = vpop.f32.mrf.mxu0 }
 0x438   :  { %v3528_v23 = vadd.f32 %v2700_v34, %v1102_v45  ;;  %v1203_v61 = vmul.f32 %v3560_v53, %v3560_v53  ;;  %v1199_v41 = vmul.f32 %v3598_v33, %v3598_v33  ;;  %v2950_v34 = vld [vmem:[#allocation11 + $0xf0] ss:$8 sps:$4 sm:$0xff]  }
 0x439   :  { %v3459_v44 = vpop.f32.mrf.mxu0 }
 0x43a   :  { %v1206_v27 = vmul.f32 %v3528_v23, %v3528_v23  ;;  %v3550_v50 = vadd.f32 %v1100_v24, %v3459_v44  ;;  %v2955_v44 = vld [vmem:[#allocation11 + $0xe4] ss:$8 sps:$4 sm:$0xff]  }
 0x43b   :  { %v2703_v51 = vpop.f32.mrf.mxu0 }
 0x43c   :  { %v3501_v15 = vadd.f32 %v2703_v51, %v1105_v39  ;;  %v1204_v56 = vmul.f32 %v3550_v50, %v3550_v50  ;;  %v2953_v51 = vld [vmem:[#allocation11 + $0xe0] ss:$8 sps:$4 sm:$0xff]  }
 0x43d   :  { %v1057_v52 = vpop.f32.mrf.mxu0 }
 0x43e   :  { %v1209_v21 = vmul.f32 %v3501_v15, %v3501_v15  ;;  %v3521_v22 = vadd.f32 %v1103_v18, %v1057_v52  ;;  %v2958_v52 = vld [vmem:[#allocation11 + $0xd4] ss:$8 sps:$4 sm:$0xff]  }
 0x43f   :  { %v2704_v54 = vpop.f32.mrf.mxu0 }
 0x440   :  { %v3492_v37 = vadd.f32 %v2704_v54, %v1106_v11  ;;  %v1207_v6 = vmul.f32 %v3521_v22, %v3521_v22  ;;  %v2956_v54 = vld [vmem:[#allocation11 + $0xd0] ss:$8 sps:$4 sm:$0xff]  }
 0x441   :  { %v1060_v57 = vpop.f32.mrf.mxu0 }
 0x442   :  { %v1210_v19 = vmul.f32 %v3492_v37, %v3492_v37  ;;  %v3512_v20 = vadd.f32 %v1104_v14, %v1060_v57  ;;  %v2961_v57 = vld [vmem:[#allocation11 + $0xc4] ss:$8 sps:$4 sm:$0xff]  }
 0x443   :  { %v2707_v59 = vpop.f32.mrf.mxu0 }
 0x444   :  { %v3469_v4 = vadd.f32 %v2707_v59, %v1109_v63  ;;  %v1208_v48 = vmul.f32 %v3512_v20, %v3512_v20  ;;  %v2959_v59 = vld [vmem:[#allocation11 + $0xc0] ss:$8 sps:$4 sm:$0xff]  }
 0x445   :  { %v1073_v2 = vpop.f32.mrf.mxu0  ;;  %v2965_v63 = vld [vmem:[#allocation11 + $0xa0] ss:$8 sps:$4 sm:$0xff]  }
 0x446   :  { %v1213_v12 = vmul.f32 %v3469_v4, %v3469_v4  ;;  %v3485_v13 = vadd.f32 %v1107_v8, %v1073_v2  ;;  %v2962_v2 = vld [vmem:[#allocation11 + $0xb0] ss:$8 sps:$4 sm:$0xff]  }
 0x447   :  { %v2708_v55 = vpop.f32.mrf.mxu0 }
 0x448   :  { %v3471_v5 = vadd.f32 %v2708_v55, %v1110_v58  ;;  %v1211_v42 = vmul.f32 %v3485_v13, %v3485_v13  ;;  %v2970_v58 = vld [vmem:[#allocation11 + $0x94] ss:$8 sps:$4 sm:$0xff]   ;;  %v2968_v55 = vld [vmem:[#allocation11 + $0x90] ss:$8 sps:$4 sm:$0xff]  }
 0x449   :  { %v1076_v7 = vpop.f32.mrf.mxu0 }
 0x44a   :  { %v1214_v9 = vmul.f32 %v3471_v5, %v3471_v5  ;;  %v3477_v10 = vadd.f32 %v1108_v3, %v1076_v7  ;;  %2710 = vmatpush3.msra.mxu0 %v3471_v5  ;;  %v2973_v3 = vld [vmem:[#allocation11 + $0x84] ss:$8 sps:$4 sm:$0xff]   ;;  %v2971_v7 = vld [vmem:[#allocation11 + $0x80] ss:$8 sps:$4 sm:$0xff]  }
 0x44b   :  { %2711 = vmatprep.subr.mxu0 %v3134_v16 }
 0x44c   :  { %2712 = vmatpush3.msra.mxu0 %v3469_v4  ;;  %2745 = vmatpush3.msra.mxu1 %v1214_v9  ;;  %v1212_v40 = vmul.f32 %v3477_v10, %v3477_v10 }
 0x44d   :  { %2713 = vmatprep.subr.mxu0 %v3134_v16  ;;  %2746 = vmatprep.subr.mxu1 %v3134_v16 }
 0x44e   :  { %2714 = vmatpush3.msra.mxu0 %v3477_v10  ;;  %2747 = vmatpush3.msra.mxu1 %v1213_v12 }
 0x44f   :  { %2715 = vmatprep.subr.mxu0 %v3134_v16  ;;  %2748 = vmatprep.subr.mxu1 %v3134_v16 }
 0x450   :  { %2716 = vmatpush3.msra.mxu0 %v3485_v13  ;;  %2749 = vmatpush3.msra.mxu1 %v1212_v40 }
 0x451   :  { %2717 = vmatprep.subr.mxu0 %v3134_v16  ;;  %2750 = vmatprep.subr.mxu1 %v3134_v16 }
 0x452   :  { %2718 = vmatpush3.msra.mxu0 %v3492_v37  ;;  %2751 = vmatpush3.msra.mxu1 %v1211_v42 }
 0x453   :  { %2719 = vmatprep.subr.mxu0 %v3134_v16  ;;  %2752 = vmatprep.subr.mxu1 %v3134_v16 }
 0x454   :  { %2720 = vmatpush3.msra.mxu0 %v3501_v15  ;;  %2753 = vmatpush3.msra.mxu1 %v1210_v19  ;;  %v1127_v19 = vld [vmem:[%s3860_s8] sm:$0x1] }
 0x455   :  { %2721 = vmatprep.subr.mxu0 %v3134_v16  ;;  %2754 = vmatprep.subr.mxu1 %v3134_v16 }
 0x456   :  { %2722 = vmatpush3.msra.mxu0 %v3512_v20  ;;  %2755 = vmatpush3.msra.mxu1 %v1209_v21 }
 0x457   :  { %2723 = vmatprep.subr.mxu0 %v3134_v16  ;;  %2756 = vmatprep.subr.mxu1 %v3134_v16 }
 0x458   :  { %2724 = vmatpush3.msra.mxu0 %v3521_v22  ;;  %2757 = vmatpush3.msra.mxu1 %v1208_v48 }
 0x459   :  { %2725 = vmatprep.subr.mxu0 %v3134_v16  ;;  %2758 = vmatprep.subr.mxu1 %v3134_v16 }
 0x45a   :  { %2726 = vmatpush3.msra.mxu0 %v3528_v23  ;;  %2759 = vmatpush3.msra.mxu1 %v1207_v6 }
 0x45b   :  { %2727 = vmatprep.subr.mxu0 %v3134_v16  ;;  %2760 = vmatprep.subr.mxu1 %v3134_v16 }
 0x45c   :  { %2728 = vmatpush3.msra.mxu0 %v3538_v25  ;;  %2761 = vmatpush3.msra.mxu1 %v1206_v27 }
 0x45d   :  { %2729 = vmatprep.subr.mxu0 %v3134_v16  ;;  %2762 = vmatprep.subr.mxu1 %v3134_v16 }
 0x45e   :  { %2730 = vmatpush3.msra.mxu0 %v3550_v50  ;;  %2763 = vmatpush3.msra.mxu1 %v1205_v29 }
 0x45f   :  { %2731 = vmatprep.subr.mxu0 %v3134_v16  ;;  %2764 = vmatprep.subr.mxu1 %v3134_v16 }
 0x460   :  { %2732 = vmatpush3.msra.mxu0 %v3560_v53  ;;  %2765 = vmatpush3.msra.mxu1 %v1204_v56 }
 0x461   :  { %2733 = vmatprep.subr.mxu0 %v3134_v16  ;;  %2766 = vmatprep.subr.mxu1 %v3134_v16 }
 0x462   :  { %2734 = vmatpush3.msra.mxu0 %v3568_v31  ;;  %2767 = vmatpush3.msra.mxu1 %v1203_v61 }
 0x463   :  { %2735 = vmatprep.subr.mxu0 %v3134_v16  ;;  %2768 = vmatprep.subr.mxu1 %v3134_v16 }
 0x464   :  { %2736 = vmatpush3.msra.mxu0 %v3578_v36  ;;  %2769 = vmatpush3.msra.mxu1 %v1202_v49 }
 0x465   :  { %2737 = vmatprep.subr.mxu0 %v3134_v16  ;;  %2770 = vmatprep.subr.mxu1 %v3134_v16 }
 0x466   :  { %2738 = vmatpush3.msra.mxu0 %v3590_v0  ;;  %2771 = vmatpush3.msra.mxu1 %v1201_v38 }
 0x467   :  { %2739 = vmatprep.subr.mxu0 %v3134_v16  ;;  %2772 = vmatprep.subr.mxu1 %v3134_v16 }
 0x468   :  { %2740 = vmatpush3.msra.mxu0 %v3598_v33  ;;  %2773 = vmatpush3.msra.mxu1 %v1200_v60 }
 0x469   :  { %2742 = vmatmul.mubr.f32.vlgmr.msra.gmra.mxu0 %v3374_v1  ;;  %2774 = vmatprep.subr.mxu1 %v3134_v16 }
 0x46a   :  { %2775 = vmatpush3.msra.mxu1 %v1199_v41  ;;  %1627 = vmatprep.mubr.bf16.mxu0 %v3136_v17 }
 0x46b   :  { %2777 = vmatmul.mubr.f32.vlgmr.msra.gmra.mxu1 %v3374_v1  ;;  %1595 = vmatprep.subr.bf16.mxu0 %v2952_v46  ;;  %v2967_v1 = vld [vmem:[#allocation11 + $0xa4] ss:$8 sps:$4 sm:$0xff]  }
 0x46c   :  { %1596 = vmatpush1.bf16.msra.mxu0 %v2950_v34 }
 0x46d   :  { %1597 = vmatprep.subr.bf16.mxu0 %v2955_v44 }
 0x470   :  { %1598 = vmatpush1.bf16.msra.mxu0 %v2953_v51 }
 0x471   :  { %1599 = vmatprep.subr.bf16.mxu0 %v2958_v52 }
 0x474   :  { %1600 = vmatpush1.bf16.msra.mxu0 %v2956_v54 }
 0x475   :  { %1601 = vmatprep.subr.bf16.mxu0 %v2961_v57 }
 0x478   :  { %1602 = vmatpush1.bf16.msra.mxu0 %v2959_v59 }
 0x479   :  { %1603 = vmatprep.subr.bf16.mxu0 %v2964_v62 }
 0x47c   :  { %1604 = vmatpush1.bf16.msra.mxu0 %v2962_v2 }
 0x47d   :  { %1605 = vmatprep.subr.bf16.mxu0 %v2967_v1 }
 0x480   :  { %1606 = vmatpush1.bf16.msra.mxu0 %v2965_v63 }
 0x481   :  { %1607 = vmatprep.subr.bf16.mxu0 %v2970_v58 }
 0x484   :  { %1608 = vmatpush1.bf16.msra.mxu0 %v2968_v55 }
 0x485   :  { %1609 = vmatprep.subr.bf16.mxu0 %v2973_v3 }
 0x488   :  { %1610 = vmatpush1.bf16.msra.mxu0 %v2971_v7 }
 0x489   :  { %2846 = vmatprep.subr.mxu0 %v3134_v16 }
 0x529   :  { %v1195_v8 = vpop.f32.mrf.mxu0 }
 0x52a   :  { %v1285_v9 = vmul.f32 0.125, %v1195_v8 }
 0x52b   :  { %v2743_v11 = vpop.f32.mrf.mxu0  ;;  %v1281_v12 = vpop.f32.mrf.mxu1 }
 0x52c   :  { %v1287_v39 = vmul.f32 %v1285_v9, %v1285_v9  ;;  %v1286_v40 = vmul.f32 0.125, %v1281_v12 }
 0x52d   :  { %v2778_v14 = vpop.f32.mrf.mxu1 }
 0x52e   :  { %v1288_v42 = vsub.f32 %v1286_v40, %v1287_v39 }
 0x530   :  { %v1289_v18 = vadd.f32 1e-05, %v1288_v42 }
 0x532   :  { %2992 = vrsqrt.f32 %v1289_v18 }
 0x53f   :  { %v2993_v45 = vpop.eup %2992 }
 0x540   :  { %v1291_v21 = vmul.f32 %v2993_v45, %v1127_v19 }
 0x542   :  { %v1292_v48 = vmul.f32 %v1291_v21, %v1285_v9  ;;  %v1298_v24 = vrot.slane %v1291_v21, %v3386_v35 }
 0x544   :  { %v1293_v6 = vsub.f32 %v1128_v47, %v1292_v48  ;;  %v1300_v26 = vmul.f32 %v1298_v24, %v3598_v33  ;;  %v1301_v27 = vmul.f32 %v1298_v24, %v3590_v0  ;;  %v1302_v28 = vmul.f32 %v1298_v24, %v3578_v36 }
 0x545   :  { %v1303_v29 = vmul.f32 %v1298_v24, %v3568_v31  ;;  %v1304_v30 = vmul.f32 %v1298_v24, %v3560_v53  ;;  %v1305_v56 = vmul.f32 %v1298_v24, %v3550_v50  ;;  %v1306_v32 = vmul.f32 %v1298_v24, %v3538_v25 }
 0x546   :  { %v1320_v61 = vrot.slane %v1293_v6, %v3386_v35  ;;  %v1307_v43 = vmul.f32 %v1298_v24, %v3528_v23  ;;  %v1308_v49 = vmul.f32 %v1298_v24, %v3521_v22  ;;  %v1309_v38 = vmul.f32 %v1298_v24, %v3512_v20 }
 0x547   :  { %v1310_v0 = vmul.f32 %v1298_v24, %v3501_v15  ;;  %v1311_v36 = vmul.f32 %v1298_v24, %v3492_v37  ;;  %v1312_v31 = vmul.f32 %v1298_v24, %v3485_v13  ;;  %v1313_v53 = vmul.f32 %v1298_v24, %v3477_v10 }
 0x548   :  { %v1322_v33 = vadd.f32 %v1320_v61, %v1300_v26  ;;  %v1323_v50 = vadd.f32 %v1320_v61, %v1301_v27  ;;  %v1324_v60 = vadd.f32 %v1320_v61, %v1302_v28  ;;  %v1325_v25 = vadd.f32 %v1320_v61, %v1303_v29 }
 0x549   :  { %v1326_v41 = vadd.f32 %v1320_v61, %v1304_v30  ;;  %v1327_v46 = vadd.f32 %v1320_v61, %v1305_v56  ;;  %v1328_v34 = vadd.f32 %v1320_v61, %v1306_v32  ;;  %v1329_v23 = vadd.f32 %v1320_v61, %v1307_v43  ;;  %v2982_v30 = vld [vmem:[#allocation6] sm:$0xff]  }
 0x54a   :  { %v1338_v44 = vmax.f32 %v1322_v33, 0.0  ;;  %v1339_v22 = vmax.f32 %v1323_v50, 0.0  ;;  %v1340_v51 = vmax.f32 %v1324_v60, 0.0  ;;  %v1341_v20 = vmax.f32 %v1325_v25, 0.0  ;;  %2795 = vmatprep.mubr.bf16.mxu1 %v2982_v30 }
 0x54b   :  { %v1342_v52 = vmax.f32 %v1326_v41, 0.0  ;;  %v1343_v15 = vmax.f32 %v1327_v46, 0.0  ;;  %v1344_v54 = vmax.f32 %v1328_v34, 0.0  ;;  %v1345_v37 = vmax.f32 %v1329_v23, 0.0 }
 0x54c   :  { %v2374_v57 = vpack.c.bf16 %v1339_v22, %v1338_v44  ;;  %v2379_v13 = vpack.c.bf16 %v1341_v20, %v1340_v51  ;;  %v1330_v59 = vadd.f32 %v1320_v61, %v1308_v49  ;;  %v1331_v10 = vadd.f32 %v1320_v61, %v1309_v38 }
 0x54d   :  { %v2384_v62 = vpack.c.bf16 %v1343_v15, %v1342_v52  ;;  %v2389_v2 = vpack.c.bf16 %v1345_v37, %v1344_v54  ;;  %v1332_v1 = vadd.f32 %v1320_v61, %v1310_v0  ;;  %v1333_v63 = vadd.f32 %v1320_v61, %v1311_v36 }
 0x54e   :  { %2375 = vst [vmem:[#allocation2] sm:$0xff] %v2374_v57   ;;  %2418 = vst [vmem:[#allocation2 + $0x8] sm:$0xff] %v2379_v13   ;;  %v1346_v58 = vmax.f32 %v1330_v59, 0.0  ;;  %v1347_v55 = vmax.f32 %v1331_v10, 0.0  ;;  %v1334_v3 = vadd.f32 %v1320_v61, %v1312_v31  ;;  %v1335_v7 = vadd.f32 %v1320_v61, %v1313_v53 }
 0x54f   :  { %2419 = vst [vmem:[#allocation2 + $0x10] sm:$0xff] %v2384_v62   ;;  %2420 = vst [vmem:[#allocation2 + $0x18] sm:$0xff] %v2389_v2   ;;  %v1348_v8 = vmax.f32 %v1332_v1, 0.0  ;;  %v1349_v9 = vmax.f32 %v1333_v63, 0.0  ;;  %v1314_v11 = vmul.f32 %v1298_v24, %v3469_v4  ;;  %v1315_v12 = vmul.f32 %v1298_v24, %v3471_v5 }
 0x550   :  { %v2394_v39 = vpack.c.bf16 %v1347_v55, %v1346_v58  ;;  %v1350_v40 = vmax.f32 %v1334_v3, 0.0  ;;  %v1351_v14 = vmax.f32 %v1335_v7, 0.0 }
 0x551   :  { %v2399_v42 = vpack.c.bf16 %v1349_v9, %v1348_v8  ;;  %v1336_v18 = vadd.f32 %v1320_v61, %v1314_v11  ;;  %v1337_v19 = vadd.f32 %v1320_v61, %v1315_v12  ;;  %v2983_v9 = vld [vmem:[#allocation6 + $0x8] sm:$0xff]   ;;  %v2984_v11 = vld [vmem:[#allocation6 + $0x10] sm:$0xff]   ;;  %v2985_v12 = vld [vmem:[#allocation6 + $0x18] sm:$0xff]  }
 0x552   :  { %2421 = vst [vmem:[#allocation2 + $0x20] sm:$0xff] %v2394_v39   ;;  %v2404_v45 = vpack.c.bf16 %v1351_v14, %v1350_v40  ;;  %v2986_v39 = vld [vmem:[#allocation6 + $0x20] sm:$0xff]   ;;  %v2987_v40 = vld [vmem:[#allocation6 + $0x28] sm:$0xff]   ;;  %v2988_v14 = vld [vmem:[#allocation6 + $0x30] sm:$0xff]  }
 0x553   :  { %2422 = vst [vmem:[#allocation2 + $0x28] sm:$0xff] %v2399_v42   ;;  %v1352_v21 = vmax.f32 %v1336_v18, 0.0  ;;  %v1353_v47 = vmax.f32 %v1337_v19, 0.0  ;;  %v2989_v42 = vld [vmem:[#allocation6 + $0x38] sm:$0xff]  }
 0x554   :  { %2423 = vst [vmem:[#allocation2 + $0x30] sm:$0xff] %v2404_v45  }
 0x555   :  { %v2974_v48 = vld [vmem:[#allocation2] sm:$0xff]   ;;  %v2409_v6 = vpack.c.bf16 %v1353_v47, %v1352_v21  ;;  %v2975_v4 = vld [vmem:[#allocation2 + $0x8] sm:$0xff]  }
 0x556   :  { %1628 = vmatmul.mubr.bf16.vlgmr.msra.gmra.mxu0 %v2974_v48  ;;  %v2976_v5 = vld [vmem:[#allocation2 + $0x10] sm:$0xff]   ;;  %v2977_v24 = vld [vmem:[#allocation2 + $0x18] sm:$0xff]  }
 0x557   :  { %2424 = vst [vmem:[#allocation2 + $0x38] sm:$0xff] %v2409_v6   ;;  %1637 = vmatprep.mubr.bf16.mxu0 %v3136_v17 }
 0x559   :  { %v2978_v26 = vld [vmem:[#allocation2 + $0x20] sm:$0xff]  }
 0x55a   :  { %v2979_v27 = vld [vmem:[#allocation2 + $0x28] sm:$0xff]  }
 0x55b   :  { %v2980_v28 = vld [vmem:[#allocation2 + $0x30] sm:$0xff]  }
 0x55e   :  { %1638 = vmatmul.mubr.bf16.gmra.mxu0 %v2975_v4  ;;  %v2981_v29 = vld [vmem:[#allocation2 + $0x38] sm:$0xff]  }
 0x55f   :  { %1647 = vmatprep.mubr.bf16.mxu0 %v3136_v17 }
 0x566   :  { %1648 = vmatmul.mubr.bf16.gmra.mxu0 %v2976_v5 }
 0x567   :  { %1657 = vmatprep.mubr.bf16.mxu0 %v3136_v17 }
 0x56e   :  { %1658 = vmatmul.mubr.bf16.gmra.mxu0 %v2977_v24 }
 0x56f   :  { %1667 = vmatprep.mubr.bf16.mxu0 %v3136_v17 }
 0x576   :  { %1668 = vmatmul.mubr.bf16.gmra.mxu0 %v2978_v26 }
 0x577   :  { %1677 = vmatprep.mubr.bf16.mxu0 %v3136_v17 }
 0x57e   :  { %1678 = vmatmul.mubr.bf16.gmra.mxu0 %v2979_v27 }
 0x57f   :  { %1687 = vmatprep.mubr.bf16.mxu0 %v3136_v17 }
 0x586   :  { %1688 = vmatmul.mubr.bf16.gmra.mxu0 %v2980_v28 }
 0x587   :  { %1697 = vmatprep.mubr.bf16.mxu0 %v3136_v17 }
 0x58e   :  { %1698 = vmatmul.mubr.bf16.gmra.mxu0 %v2981_v29  ;;  %v3695_v29 = vld [vmem:[%s3859_s7 + $0x1] ss:$0 sm:$0xff] }
 0x58f   :  { %2878 = vmatprep.mubr.msk.f32.mxu0 %vm3135_vm0, %v3134_v16 }
 0x616   :  { %v3649_v56 = vpop.f32.mrf.mxu0 }
 0x618   :  { %v1631_v32 = vpop.f32.mrf.mxu0 }
 0x61a   :  { %v3651_v61 = vpop.f32.mrf.mxu0 }
 0x61c   :  { %v1635_v43 = vpop.f32.mrf.mxu0 }
 0x61d   :  { %v1708_v49 = vpack.c.bf16 %v1635_v43, %v1631_v32 }
 0x61e   :  { %v3653_v38 = vpop.f32.mrf.mxu0 }
 0x620   :  { %v1641_v0 = vpop.f32.mrf.mxu0 }
 0x622   :  { %v3655_v36 = vpop.f32.mrf.mxu0 }
 0x624   :  { %v1645_v17 = vpop.f32.mrf.mxu0 }
 0x625   :  { %v1709_v31 = vpack.c.bf16 %v1645_v17, %v1641_v0 }
 0x626   :  { %v3657_v53 = vpop.f32.mrf.mxu0 }
 0x628   :  { %v1651_v33 = vpop.f32.mrf.mxu0 }
 0x62a   :  { %v3659_v50 = vpop.f32.mrf.mxu0 }
 0x62c   :  { %v1655_v60 = vpop.f32.mrf.mxu0 }
 0x62d   :  { %v1710_v8 = vpack.c.bf16 %v1655_v60, %v1651_v33 }
 0x62e   :  { %v3661_v25 = vpop.f32.mrf.mxu0 }
 0x630   :  { %v1661_v41 = vpop.f32.mrf.mxu0 }
 0x632   :  { %v3663_v46 = vpop.f32.mrf.mxu0 }
 0x634   :  { %v1665_v34 = vpop.f32.mrf.mxu0 }
 0x635   :  { %v1711_v7 = vpack.c.bf16 %v1665_v34, %v1661_v41 }
 0x636   :  { %v3665_v23 = vpop.f32.mrf.mxu0 }
 0x638   :  { %v1671_v44 = vpop.f32.mrf.mxu0 }
 0x63a   :  { %v3667_v22 = vpop.f32.mrf.mxu0 }
 0x63c   :  { %v1675_v51 = vpop.f32.mrf.mxu0 }
 0x63d   :  { %v1712_v3 = vpack.c.bf16 %v1675_v51, %v1671_v44 }
 0x63e   :  { %v3669_v20 = vpop.f32.mrf.mxu0 }
 0x640   :  { %v1681_v52 = vpop.f32.mrf.mxu0 }
 0x642   :  { %v3671_v15 = vpop.f32.mrf.mxu0 }
 0x643   :  { %v1896_v44 = vadd.f32 %v3695_v29, %v3671_v15 }
 0x644   :  { %v1685_v54 = vpop.f32.mrf.mxu0 }
 0x645   :  { %v1713_v55 = vpack.c.bf16 %v1685_v54, %v1681_v52  ;;  %v1895_v54 = vadd.f32 %v3695_v29, %v3669_v20 }
 0x646   :  { %v3673_v37 = vpop.f32.mrf.mxu0 }
 0x647   :  { %v1897_v60 = vadd.f32 %v3695_v29, %v3673_v37 }
 0x648   :  { %v1691_v57 = vpop.f32.mrf.mxu0 }
 0x64a   :  { %v1693_v13 = vpop.f32.mrf.mxu0 }
 0x64b   :  { %v1898_v0 = vadd.f32 %v3695_v29, %v1693_v13 }
 0x64c   :  { %v1695_v59 = vpop.f32.mrf.mxu0 }
 0x64d   :  { %v1714_v58 = vpack.c.bf16 %v1695_v59, %v1691_v57  ;;  %v1894_v57 = vadd.f32 %v3695_v29, %v3667_v22  ;;  %v1893_v59 = vadd.f32 %v3695_v29, %v3665_v23  ;;  %v1892_v22 = vadd.f32 %v3695_v29, %v3663_v46 }
 0x64e   :  { %v1699_v10 = vpop.f32.mrf.mxu0  ;;  %v1891_v23 = vadd.f32 %v3695_v29, %v3661_v25 }
 0x64f   :  { %v1899_v32 = vadd.f32 %v3695_v29, %v1699_v10 }
 0x650   :  { %v1701_v62 = vpop.f32.mrf.mxu0 }
 0x652   :  { %v1703_v2 = vpop.f32.mrf.mxu0 }
 0x653   :  { %v1900_v43 = vadd.f32 %v3695_v29, %v1703_v2 }
 0x654   :  { %v1705_v1 = vpop.f32.mrf.mxu0 }
 0x655   :  { %v1715_v63 = vpack.c.bf16 %v1705_v1, %v1701_v62 }
 0x657   :  { %2779 = vmatprep.subr.bf16.mxu1 %v1715_v63 }
 0x658   :  { %2780 = vmatpush3.bf16.msra.mxu1 %v1715_v63 }
 0x659   :  { %2781 = vmatprep.subr.bf16.mxu1 %v1714_v58 }
 0x65c   :  { %2782 = vmatpush3.bf16.msra.mxu1 %v1714_v58  ;;  %v1890_v58 = vadd.f32 %v3695_v29, %v3659_v50 }
 0x65d   :  { %2783 = vmatprep.subr.bf16.mxu1 %v1713_v55 }
 0x660   :  { %2784 = vmatpush3.bf16.msra.mxu1 %v1713_v55 }
 0x661   :  { %2785 = vmatprep.subr.bf16.mxu1 %v1712_v3 }
 0x664   :  { %2786 = vmatpush3.bf16.msra.mxu1 %v1712_v3  ;;  %v1889_v3 = vadd.f32 %v3695_v29, %v3657_v53 }
 0x665   :  { %2787 = vmatprep.subr.bf16.mxu1 %v1711_v7 }
 0x668   :  { %2788 = vmatpush3.bf16.msra.mxu1 %v1711_v7 }
 0x669   :  { %2789 = vmatprep.subr.bf16.mxu1 %v1710_v8 }
 0x66c   :  { %2790 = vmatpush3.bf16.msra.mxu1 %v1710_v8  ;;  %v1888_v8 = vadd.f32 %v3695_v29, %v3655_v36 }
 0x66d   :  { %2791 = vmatprep.subr.bf16.mxu1 %v1709_v31 }
 0x670   :  { %2792 = vmatpush3.bf16.msra.mxu1 %v1709_v31 }
 0x671   :  { %2793 = vmatprep.subr.bf16.mxu1 %v1708_v49 }
 0x674   :  { %2794 = vmatpush3.bf16.msra.mxu1 %v1708_v49 }
 0x675   :  { %2811 = vmatprep.subr.mxu1 %v3134_v16 }
 0x677   :  { %2796 = vmatmul.mubr.bf16.vlgmr.msra.gmra.mxu1 %v2983_v9 }
 0x678   :  { %2799 = vmatprep.mubr.bf16.mxu1 %v2984_v11  ;;  %v1887_v11 = vadd.f32 %v3695_v29, %v3653_v38 }
 0x67f   :  { %2800 = vmatmul.mubr.bf16.gmra.mxu1 %v2985_v12 }
 0x680   :  { %2803 = vmatprep.mubr.bf16.mxu1 %v2986_v39  ;;  %v1886_v39 = vadd.f32 %v3695_v29, %v3651_v61 }
 0x687   :  { %2804 = vmatmul.mubr.bf16.gmra.mxu1 %v2987_v40 }
 0x688   :  { %2807 = vmatprep.mubr.bf16.mxu1 %v2988_v14  ;;  %v1885_v14 = vadd.f32 %v3695_v29, %v3649_v56  ;;  %v2297_v29 = vld [vmem:[%s3860_s8 + $0x1] sm:$0x1]  ;;  %s3137_s8 = smov [#allocation12]  }
 0x68f   :  { %2808 = vmatmul.mubr.bf16.gmra.mxu1 %v2989_v42 }
 0x690   :  { %2843 = vmatprep.mubr.msk.f32.mxu1 %vm3135_vm0, %v3134_v16 }
 0x737   :  { %v3678_v18 = vpop.f32.mrf.mxu1 }
 0x738   :  { %v1903_v40 = vadd.f32 %v3678_v18, %v1887_v11 }
 0x739   :  { %v3680_v19 = vpop.f32.mrf.mxu1 }
 0x73a   :  { %v1993_v61 = vmul.f32 %v1903_v40, %v1903_v40  ;;  %v1901_v18 = vadd.f32 %v1885_v14, %v3680_v19  ;;  %v2996_v19 = vld [vmem:[%s3862_s10] sm:$0x1] }
 0x73b   :  { %v3682_v45 = vpop.f32.mrf.mxu1 }
 0x73c   :  { %v1904_v12 = vadd.f32 %v3682_v45, %v1888_v8  ;;  %v1991_v56 = vmul.f32 %v1901_v18, %v1901_v18 }
 0x73d   :  { %v3684_v21 = vpop.f32.mrf.mxu1 }
 0x73e   :  { %v1994_v42 = vmul.f32 %v1904_v12, %v1904_v12  ;;  %v1902_v45 = vadd.f32 %v1886_v39, %v3684_v21 }
 0x73f   :  { %v3686_v47 = vpop.f32.mrf.mxu1 }
 0x740   :  { %v3769_v55 = vadd.f32 %v3686_v47, %v1891_v23  ;;  %v1992_v47 = vmul.f32 %v1902_v45, %v1902_v45 }
 0x741   :  { %v3688_v48 = vpop.f32.mrf.mxu1 }
 0x742   :  { %v1997_v9 = vmul.f32 %v3769_v55, %v3769_v55  ;;  %v3791_v53 = vadd.f32 %v1889_v3, %v3688_v48 }
 0x743   :  { %v2802_v6 = vpop.f32.mrf.mxu1 }
 0x744   :  { %v3759_v63 = vadd.f32 %v2802_v6, %v1892_v22  ;;  %v1995_v38 = vmul.f32 %v3791_v53, %v3791_v53 }
 0x745   :  { %v3690_v4 = vpop.f32.mrf.mxu1 }
 0x746   :  { %v1998_v7 = vmul.f32 %v3759_v63, %v3759_v63  ;;  %v3781_v50 = vadd.f32 %v1890_v58, %v3690_v4 }
 0x747   :  { %v2805_v5 = vpop.f32.mrf.mxu1 }
 0x748   :  { %v3732_v13 = vadd.f32 %v2805_v5, %v1895_v54  ;;  %v1996_v36 = vmul.f32 %v3781_v50, %v3781_v50 }
 0x749   :  { %v1846_v24 = vpop.f32.mrf.mxu1 }
 0x74a   :  { %v2001_v2 = vmul.f32 %v3732_v13, %v3732_v13  ;;  %v3752_v1 = vadd.f32 %v1893_v59, %v1846_v24 }
 0x74b   :  { %v2806_v26 = vpop.f32.mrf.mxu1 }
 0x74c   :  { %v3723_v37 = vadd.f32 %v2806_v26, %v1896_v44  ;;  %v1999_v25 = vmul.f32 %v3752_v1, %v3752_v1 }
 0x74d   :  { %v1849_v27 = vpop.f32.mrf.mxu1 }
 0x74e   :  { %v2002_v10 = vmul.f32 %v3723_v37, %v3723_v37  ;;  %v3743_v62 = vadd.f32 %v1894_v57, %v1849_v27 }
 0x74f   :  { %v2809_v28 = vpop.f32.mrf.mxu1 }
 0x750   :  { %v3700_v17 = vadd.f32 %v2809_v28, %v1899_v32  ;;  %v2000_v46 = vmul.f32 %v3743_v62, %v3743_v62 }
 0x751   :  { %v1862_v30 = vpop.f32.mrf.mxu1 }
 0x752   :  { %v2005_v51 = vmul.f32 %v3700_v17, %v3700_v17  ;;  %v3716_v52 = vadd.f32 %v1897_v60, %v1862_v30 }
 0x753   :  { %v2810_v49 = vpop.f32.mrf.mxu1 }
 0x754   :  { %v3702_v31 = vadd.f32 %v2810_v49, %v1900_v43  ;;  %v2003_v20 = vmul.f32 %v3716_v52, %v3716_v52 }
 0x755   :  { %v1865_v33 = vpop.f32.mrf.mxu1 }
 0x756   :  { %v2006_v41 = vmul.f32 %v3702_v31, %v3702_v31  ;;  %v3708_v34 = vadd.f32 %v1898_v0, %v1865_v33  ;;  %2812 = vmatpush3.msra.mxu1 %v3702_v31 }
 0x757   :  { %2813 = vmatprep.subr.mxu1 %v3134_v16 }
 0x758   :  { %2814 = vmatpush3.msra.mxu1 %v3700_v17  ;;  %2847 = vmatpush3.msra.mxu0 %v2006_v41  ;;  %v2004_v15 = vmul.f32 %v3708_v34, %v3708_v34 }
 0x759   :  { %2815 = vmatprep.subr.mxu1 %v3134_v16  ;;  %2848 = vmatprep.subr.mxu0 %v3134_v16 }
 0x75a   :  { %2816 = vmatpush3.msra.mxu1 %v3708_v34  ;;  %2849 = vmatpush3.msra.mxu0 %v2005_v51 }
 0x75b   :  { %2817 = vmatprep.subr.mxu1 %v3134_v16  ;;  %2850 = vmatprep.subr.mxu0 %v3134_v16 }
 0x75c   :  { %2818 = vmatpush3.msra.mxu1 %v3716_v52  ;;  %2851 = vmatpush3.msra.mxu0 %v2004_v15 }
 0x75d   :  { %2819 = vmatprep.subr.mxu1 %v3134_v16  ;;  %2852 = vmatprep.subr.mxu0 %v3134_v16 }
 0x75e   :  { %2820 = vmatpush3.msra.mxu1 %v3723_v37  ;;  %2853 = vmatpush3.msra.mxu0 %v2003_v20 }
 0x75f   :  { %2821 = vmatprep.subr.mxu1 %v3134_v16  ;;  %2854 = vmatprep.subr.mxu0 %v3134_v16 }
 0x760   :  { %2822 = vmatpush3.msra.mxu1 %v3732_v13  ;;  %2855 = vmatpush3.msra.mxu0 %v2002_v10 }
 0x761   :  { %2823 = vmatprep.subr.mxu1 %v3134_v16  ;;  %2856 = vmatprep.subr.mxu0 %v3134_v16 }
 0x762   :  { %2824 = vmatpush3.msra.mxu1 %v3743_v62  ;;  %2857 = vmatpush3.msra.mxu0 %v2001_v2 }
 0x763   :  { %2825 = vmatprep.subr.mxu1 %v3134_v16  ;;  %2858 = vmatprep.subr.mxu0 %v3134_v16 }
 0x764   :  { %2826 = vmatpush3.msra.mxu1 %v3752_v1  ;;  %2859 = vmatpush3.msra.mxu0 %v2000_v46 }
 0x765   :  { %2827 = vmatprep.subr.mxu1 %v3134_v16  ;;  %2860 = vmatprep.subr.mxu0 %v3134_v16 }
 0x766   :  { %2828 = vmatpush3.msra.mxu1 %v3759_v63  ;;  %2861 = vmatpush3.msra.mxu0 %v1999_v25 }
 0x767   :  { %2829 = vmatprep.subr.mxu1 %v3134_v16  ;;  %2862 = vmatprep.subr.mxu0 %v3134_v16 }
 0x768   :  { %2830 = vmatpush3.msra.mxu1 %v3769_v55  ;;  %2863 = vmatpush3.msra.mxu0 %v1998_v7 }
 0x769   :  { %2831 = vmatprep.subr.mxu1 %v3134_v16  ;;  %2864 = vmatprep.subr.mxu0 %v3134_v16 }
 0x76a   :  { %2832 = vmatpush3.msra.mxu1 %v3781_v50  ;;  %2865 = vmatpush3.msra.mxu0 %v1997_v9 }
 0x76b   :  { %2833 = vmatprep.subr.mxu1 %v3134_v16  ;;  %2866 = vmatprep.subr.mxu0 %v3134_v16 }
 0x76c   :  { %2834 = vmatpush3.msra.mxu1 %v3791_v53  ;;  %2867 = vmatpush3.msra.mxu0 %v1996_v36 }
 0x76d   :  { %2835 = vmatprep.subr.mxu1 %v3134_v16  ;;  %2868 = vmatprep.subr.mxu0 %v3134_v16 }
 0x76e   :  { %2836 = vmatpush3.msra.mxu1 %v1904_v12  ;;  %2869 = vmatpush3.msra.mxu0 %v1995_v38 }
 0x76f   :  { %2837 = vmatprep.subr.mxu1 %v3134_v16  ;;  %2870 = vmatprep.subr.mxu0 %v3134_v16 }
 0x770   :  { %2838 = vmatpush3.msra.mxu1 %v1903_v40  ;;  %2871 = vmatpush3.msra.mxu0 %v1994_v42 }
 0x771   :  { %2839 = vmatprep.subr.mxu1 %v3134_v16  ;;  %2872 = vmatprep.subr.mxu0 %v3134_v16 }
 0x772   :  { %2840 = vmatpush3.msra.mxu1 %v1902_v45  ;;  %2873 = vmatpush3.msra.mxu0 %v1993_v61 }
 0x773   :  { %2841 = vmatprep.subr.mxu1 %v3134_v16  ;;  %2874 = vmatprep.subr.mxu0 %v3134_v16 }
 0x774   :  { %2842 = vmatpush3.msra.mxu1 %v1901_v18  ;;  %2875 = vmatpush3.msra.mxu0 %v1992_v47 }
 0x775   :  { %2844 = vmatmul.mubr.f32.vlgmr.msra.gmra.mxu1 %v2996_v19  ;;  %2876 = vmatprep.subr.mxu0 %v3134_v16  ;;  %v2298_v16 = vld [vmem:[%s3861_s9 + $0x1] sm:$0x1]  ;;  %s2167_s9 = sshll.u32 %s3137_s8, 4  ;;  %s2168_s9 = int_to_ptr.vmem [resolvable:$true] %s2167_s9 }
 0x776   :  { %2877 = vmatpush3.msra.mxu0 %v1991_v56  ;;  %s3097_s18 = scalar_lea.vmem %s2168_s9, 2048  ;;  %p3102_p12 = scmp.lt.s32.totalorder %s2168_s9, %s2168_s9 }
 0x777   :  { %2879 = vmatmul.mubr.f32.vlgmr.msra.gmra.mxu0 %v2996_v19  ;;  %p3098_p11 = scmp.ne.s32.totalorder %s2168_s9, %s3097_s18  ;;  %p3103_p13 = scmp.lt.s32.totalorder %s3097_s18, %s3097_s18 }
 0x779   :  { %p3104_p0 = por %p3103_p13, %p3102_p12 }
 0x77b   :  { %p3105_p1 = pnand %p3104_p0, %p3098_p11 }
 0x835   :  { %v1987_v21 = vpop.f32.mrf.mxu1 }
 0x836   :  { %v2077_v48 = vmul.f32 0.125, %v1987_v21 }
 0x837   :  { %v2073_v6 = vpop.f32.mrf.mxu0  ;;  %v2845_v4 = vpop.f32.mrf.mxu1 }
 0x838   :  { %v2079_v5 = vmul.f32 %v2077_v48, %v2077_v48  ;;  %v2078_v24 = vmul.f32 0.125, %v2073_v6 }
 0x839   :  { %v2880_v26 = vpop.f32.mrf.mxu0 }
 0x83a   :  { %v2080_v27 = vsub.f32 %v2078_v24, %v2079_v5 }
 0x83c   :  { %v2081_v28 = vadd.f32 1e-05, %v2080_v27 }
 0x83e   :  { %2994 = vrsqrt.f32 %v2081_v28 }
 0x84b   :  { %v2995_v30 = vpop.eup %2994 }
 0x84c   :  { %v2083_v32 = vmul.f32 %v2995_v30, %v2297_v29 }
 0x84e   :  { %v2084_v43 = vmul.f32 %v2083_v32, %v2077_v48  ;;  %v2090_v49 = vrot.slane %v2083_v32, %v3386_v35 }
 0x850   :  { %v2085_v0 = vsub.f32 %v2298_v16, %v2084_v43  ;;  %v2092_v33 = vmul.f32 %v2090_v49, %v1901_v18  ;;  %v2093_v60 = vmul.f32 %v2090_v49, %v1902_v45  ;;  %v2094_v41 = vmul.f32 %v2090_v49, %v1903_v40 }
 0x851   :  { %v2095_v44 = vmul.f32 %v2090_v49, %v1904_v12  ;;  %v2096_v51 = vmul.f32 %v2090_v49, %v3791_v53  ;;  %v2097_v54 = vmul.f32 %v2090_v49, %v3781_v50  ;;  %v2098_v15 = vmul.f32 %v2090_v49, %v3769_v55 }
 0x852   :  { %v2112_v57 = vrot.slane %v2085_v0, %v3386_v35  ;;  %v2099_v20 = vmul.f32 %v2090_v49, %v3759_v63  ;;  %v2100_v59 = vmul.f32 %v2090_v49, %v3752_v1  ;;  %v2101_v10 = vmul.f32 %v2090_v49, %v3743_v62 }
 0x853   :  { %v2102_v22 = vmul.f32 %v2090_v49, %v3732_v13  ;;  %v2103_v2 = vmul.f32 %v2090_v49, %v3723_v37  ;;  %v2104_v23 = vmul.f32 %v2090_v49, %v3716_v52  ;;  %v2105_v46 = vmul.f32 %v2090_v49, %v3708_v34 }
 0x854   :  { %v2106_v58 = vmul.f32 %v2090_v49, %v3700_v17  ;;  %v2107_v55 = vmul.f32 %v2090_v49, %v3702_v31  ;;  %v2114_v25 = vadd.f32 %v2112_v57, %v2092_v33  ;;  %v2115_v35 = vadd.f32 %v2112_v57, %v2093_v60 }
 0x855   :  { %v2116_v3 = vadd.f32 %v2112_v57, %v2094_v41  ;;  %v2117_v63 = vadd.f32 %v2112_v57, %v2095_v44  ;;  %v2118_v7 = vadd.f32 %v2112_v57, %v2096_v51  ;;  %v2119_v1 = vadd.f32 %v2112_v57, %v2097_v54 }
 0x856   :  { %v2120_v50 = vadd.f32 %v2112_v57, %v2098_v15  ;;  %v2121_v62 = vadd.f32 %v2112_v57, %v2099_v20  ;;  %v2122_v8 = vadd.f32 %v2112_v57, %v2100_v59  ;;  %v2123_v13 = vadd.f32 %v2112_v57, %v2101_v10 }
 0x857   :  { %v2124_v9 = vadd.f32 %v2112_v57, %v2102_v22  ;;  %v2125_v37 = vadd.f32 %v2112_v57, %v2103_v2  ;;  %v2126_v53 = vadd.f32 %v2112_v57, %v2104_v23  ;;  %v2127_v52 = vadd.f32 %v2112_v57, %v2105_v46 }
 0x858   :  { %v2128_v11 = vadd.f32 %v2112_v57, %v2106_v58  ;;  %v2129_v34 = vadd.f32 %v2112_v57, %v2107_v55  ;;  %v2130_v12 = vmax.f32 %v2114_v25, 0.0  ;;  %v2131_v17 = vmax.f32 %v2115_v35, 0.0 }
 0x859   :  { %v2132_v36 = vmax.f32 %v2116_v3, 0.0  ;;  %v2133_v31 = vmax.f32 %v2117_v63, 0.0  ;;  %v2134_v39 = vmax.f32 %v2118_v7, 0.0  ;;  %v2135_v40 = vmax.f32 %v2119_v1, 0.0 }
 0x85a   :  { %v2136_v38 = vmax.f32 %v2120_v50, 0.0  ;;  %v2137_v14 = vmax.f32 %v2121_v62, 0.0  ;;  %v2138_v42 = vmax.f32 %v2122_v8, 0.0  ;;  %v2139_v45 = vmax.f32 %v2123_v13, 0.0  ;;  %2146 = vst [vmem:[#allocation12] sm:$0xff] %v2130_v12  ;;  %2147 = vst [vmem:[#allocation12 + $0x8] sm:$0xff] %v2131_v17 }
 0x85b   :  { %v2140_v61 = vmax.f32 %v2124_v9, 0.0  ;;  %v2141_v18 = vmax.f32 %v2125_v37, 0.0  ;;  %v2142_v47 = vmax.f32 %v2126_v53, 0.0  ;;  %v2143_v56 = vmax.f32 %v2127_v52, 0.0  ;;  %2148 = vst [vmem:[#allocation12 + $0x10] sm:$0xff] %v2132_v36  ;;  %2149 = vst [vmem:[#allocation12 + $0x18] sm:$0xff] %v2133_v31 }
 0x85c   :  { %2150 = vst [vmem:[#allocation12 + $0x20] sm:$0xff] %v2134_v39  ;;  %2151 = vst [vmem:[#allocation12 + $0x28] sm:$0xff] %v2135_v40  ;;  %v2144_v19 = vmax.f32 %v2128_v11, 0.0  ;;  %v2145_v21 = vmax.f32 %v2129_v34, 0.0 }
 0x85d   :  { %2152 = vst [vmem:[#allocation12 + $0x30] sm:$0xff] %v2136_v38  ;;  %2153 = vst [vmem:[#allocation12 + $0x38] sm:$0xff] %v2137_v14 }
 0x85e   :  { %2154 = vst [vmem:[#allocation12 + $0x40] sm:$0xff] %v2138_v42  ;;  %2155 = vst [vmem:[#allocation12 + $0x48] sm:$0xff] %v2139_v45 }
 0x85f   :  { %2156 = vst [vmem:[#allocation12 + $0x50] sm:$0xff] %v2140_v61  ;;  %2157 = vst [vmem:[#allocation12 + $0x58] sm:$0xff] %v2141_v18 }
 0x860   :  { %2158 = vst [vmem:[#allocation12 + $0x60] sm:$0xff] %v2142_v47  ;;  %2159 = vst [vmem:[#allocation12 + $0x68] sm:$0xff] %v2143_v56 }
 0x861   :  { %2160 = vst [vmem:[#allocation12 + $0x70] sm:$0xff] %v2144_v19  ;;  %2161 = vst [vmem:[#allocation12 + $0x78] sm:$0xff] %v2145_v21 }
 0x862   :  { %3108 = shalt.err (!%p3105_p1)
}
 0x863   :  { %2173 = dma.vmem_to_hbm [thread:$0]  %s2168_s9, 2048, %s3863_s11, [#allocation5], %s3132_s0, %s3132_s0, %s3133_s24  }
 0x864   :  { %3123 = dma.done.wait [#allocation5], 2048  }
 0x865   :  { %3124 = vsyncadd [#allocation5], 4294965248 }
 0x866   :  { %2177 = vsyncpa [#allocation4], 1 }
 0x867   :  { %2178 = vsyncpa [#allocation7], 1 }
 0x868   :  { %2179 = vsyncpa [#allocation10], 1 }
 0x869   :  { %2180 = vsyncpa [#allocation5], 1 }

</bundles_post_ra>
